<compile_context>
chip_gen: v7x
topology: tpu7x:2x2x1
jax: 0.10.0
libtpu: 0.0.40
codegen_flags: <defaults>
</compile_context>

<pallas_src>
import functools
import math

import jax
import jax.numpy as jnp
from jax import lax
from jax.experimental import pallas as pl
from jax.experimental.pallas import tpu as pltpu

LANE = 128    # vreg lane width
SUBLANE = 8   # f32 sublane count

PARAM_DTYPE = jnp.float32   # set to jnp.bfloat16 for ~2x MXU streaming reduction


def _round_up(x, m):
    return ((x + m - 1) // m) * m


# ----------------------------------------------------------------------------
# Fused kernel: all LSTM layers + FC head, whole sequence, one invocation.
# ----------------------------------------------------------------------------
def fused_lstm_fc_kernel(x_ref, *refs, num_layers, seq_len, batch_p, hidden):
    """VMEM-resident operands:

      x_ref   : (S*Bp, Dp)   time-major, flattened, padded input
      per layer l: W_ih (In_l, GW), W_hh (H, GW), b (1, GW)   gate-packed, pre-transposed
      w_fc    : (H, Op)      FC weight (pre-transposed, lane-padded)
      b_fc    : (1, Op)
      out     : (Bp, Op)     single lane-dense output block
      scratch : xg_ref (S*Bp, GW)  hoisted input-projection for the current layer
                hseq_ref (S*Bp, H) current layer's hidden sequence (input to next layer)
    """
    n = num_layers
    layer_refs = [(refs[3 * l], refs[3 * l + 1], refs[3 * l + 2]) for l in range(n)]
    w_fc_ref = refs[3 * n]
    b_fc_ref = refs[3 * n + 1]
    out_ref = refs[3 * n + 2]
    xg_ref = refs[3 * n + 3]
    hseq_ref = refs[3 * n + 4]

    S, Bp, H = seq_len, batch_p, hidden
    GW = xg_ref.shape[1]          # packed gate width (one 128-lane tile when 4H <= 128)
    G = GW // 4                   # per-gate slab width (== H in the compact layout)
    wdt = w_fc_ref.dtype          # matmul operand dtype (f32 or bf16)

    # Gate-type lane mask (loop invariant — hoisted out of all loops).
    lane = lax.broadcasted_iota(jnp.int32, (Bp, GW), 1)
    is_g_lane = (lane >= 2 * G) & (lane < 3 * G)      # the tanh ("g") gate slab

    h = jnp.zeros((Bp, H), jnp.float32)
    for l, (w_ih_ref, w_hh_ref, b_ref) in enumerate(layer_refs):
        # ---- Hoisted non-recurrent projection: ONE GEMM over all S timesteps. ----
        xin = x_ref[...] if l == 0 else hseq_ref[...]
        xg_ref[...] = (
            jnp.dot(xin.astype(wdt), w_ih_ref[...], preferred_element_type=jnp.float32)
            + b_ref[...]
        )

        # ---- Recurrence: only h @ W_hh per step. ----
        h = jnp.zeros((Bp, H), jnp.float32)
        c = jnp.zeros((Bp, H), jnp.float32)
        # S is small & static -> full unroll with static slices.
        # TODO(synk): for long sequences switch to lax.fori_loop with partial unroll
        # and pipeline x via a time grid axis to bound code size / VMEM (v7x: 64 MiB).
        for t in range(S):
            gates = xg_ref[t * Bp:(t + 1) * Bp, :] + jnp.dot(
                h.astype(wdt), w_hh_ref[...], preferred_element_type=jnp.float32)
            # Single EUP push: sigmoid(x) = 0.5*tanh(0.5x)+0.5 blended with tanh gate.
            pre = jnp.where(is_g_lane, gates, 0.5 * gates)
            th = jnp.tanh(pre)
            act = jnp.where(is_g_lane, th, 0.5 * th + 0.5)
            # PyTorch gate order i, f, g, o — static lane slices out of the packed tile.
            i_g = act[:, 0 * G:0 * G + H]
            f_g = act[:, 1 * G:1 * G + H]
            g_g = act[:, 2 * G:2 * G + H]
            o_g = act[:, 3 * G:3 * G + H]
            c = f_g * c + i_g * g_g
            h = o_g * jnp.tanh(c)
            if l < n - 1:
                # Feeds the next layer's hoisted input GEMM.
                hseq_ref[t * Bp:(t + 1) * Bp, :] = h

    # TODO(synk): inter-layer LSTM dropout + nn.Dropout are train-only; identity at inference.
    # FC head on the last layer's final hidden state; single unmasked lane-dense store.
    out_ref[...] = (
        jnp.dot(h.astype(wdt), w_fc_ref[...], preferred_element_type=jnp.float32)
        + b_fc_ref[...]
    ).astype(out_ref.dtype)


# ----------------------------------------------------------------------------
# Wrapper (pallas_call plumbing)
# ----------------------------------------------------------------------------
def _full_block(shape):
    nd = len(shape)
    return pl.BlockSpec(shape, lambda *_: (0,) * nd)


def lstm_forecaster_forward(x, packed):
    """x: (B, S, input_dim) batch-first (like the PyTorch module). Returns (B, output_dim)."""
    input_dim, hidden_dim, num_layers, output_dim, Dp, G, GW, Op = packed["dims"]
    B, S, Din = x.shape
    assert Din == input_dim
    Bp = _round_up(max(B, SUBLANE), SUBLANE)

    # Time-major, pad (batch -> Bp sublanes, features -> Dp lanes), flatten time into rows.
    x_tm = jnp.transpose(x.astype(jnp.float32), (1, 0, 2))               # (S, B, Din)
    x_pad = jnp.pad(x_tm, ((0, 0), (0, Bp - B), (0, Dp - Din)))          # (S, Bp, Dp)
    x_flat = x_pad.reshape(S * Bp, Dp)

    flat = []
    for (w_ih, w_hh, b) in packed["layers"]:
        flat += [w_ih, w_hh, b]
    flat += [packed["w_fc"], packed["b_fc"]]

    kernel = functools.partial(
        fused_lstm_fc_kernel,
        num_layers=num_layers, seq_len=S, batch_p=Bp, hidden=hidden_dim)

    # TODO(synk): for non-trivial batch on v7x, add a batch grid axis with
    # dimension_semantics=("parallel",) to shard across both TensorCores; B=2 here
    # is below one sublane tile so a grid would be pure overhead.
    out = pl.pallas_call(
        kernel,
        out_shape=jax.ShapeDtypeStruct((Bp, Op), jnp.float32),
        in_specs=[_full_block(x_flat.shape)] + [_full_block(a.shape) for a in flat],
        out_specs=_full_block((Bp, Op)),
        scratch_shapes=[
            pltpu.VMEM((S * Bp, GW), jnp.float32),          # hoisted input-gate GEMM
            pltpu.VMEM((S * Bp, hidden_dim), jnp.float32),  # per-layer hidden sequence
        ],
        compiler_params=pltpu.CompilerParams(vmem_limit_bytes=32 * 1024 * 1024),
    )(x_flat, *flat)
    return out[:B, :output_dim]


# ----------------------------------------------------------------------------
# Parameters: PyTorch-shaped raw params + packing into the padded kernel layout.
# ----------------------------------------------------------------------------
def init_raw_params(key, input_dim, hidden_dim, num_layers, output_dim):
    """Same shapes / init range as PyTorch nn.LSTM / nn.Linear defaults."""
    k = 1.0 / math.sqrt(hidden_dim)
    layers = []
    for layer in range(num_layers):
        din = input_dim if layer == 0 else hidden_dim
        key, k1, k2, k3, k4 = jax.random.split(key, 5)
        w_ih = jax.random.uniform(k1, (4 * hidden_dim, din), jnp.float32, -k, k)
        w_hh = jax.random.uniform(k2, (4 * hidden_dim, hidden_dim), jnp.float32, -k, k)
        b_ih = jax.random.uniform(k3, (4 * hidden_dim,), jnp.float32, -k, k)
        b_hh = jax.random.uniform(k4, (4 * hidden_dim,), jnp.float32, -k, k)
        layers.append((w_ih, w_hh, b_ih, b_hh))
    key, k5, k6 = jax.random.split(key, 3)
    w_fc = jax.random.uniform(k5, (output_dim, hidden_dim), jnp.float32, -k, k)
    b_fc = jax.random.uniform(k6, (output_dim,), jnp.float32, -k, k)
    return {"layers": layers, "fc": (w_fc, b_fc)}


def pack_params(raw, input_dim, hidden_dim, num_layers, output_dim, dtype=PARAM_DTYPE):
    """Transpose to (in, gates), pack gates compactly (one 128-lane tile when 4H <= 128),
    zero-pad inert lanes, and split W_ih / W_hh (no concatenation needed in the kernel)."""
    H = hidden_dim
    if 4 * H <= LANE:
        G = H                      # compact: 4 gates share one lane tile
        GW = LANE
    else:
        G = _round_up(H, LANE)     # slab-aligned layout for large hidden dims
        GW = 4 * G
    Dp = _round_up(input_dim, LANE)
    Op = _round_up(output_dim, LANE)

    layers = []
    for l in range(num_layers):
        w_ih, w_hh, b_ih, b_hh = raw["layers"][l]
        din = input_dim if l == 0 else H
        in_pad = Dp if l == 0 else H       # layers >= 1 consume the compact H-wide h
        Wih = jnp.zeros((in_pad, GW), jnp.float32)
        Whh = jnp.zeros((H, GW), jnp.float32)
        b = jnp.zeros((1, GW), jnp.float32)
        for g in range(4):  # PyTorch gate order: i, f, g, o
            Wih = Wih.at[:din, g * G:g * G + H].set(w_ih[g * H:(g + 1) * H, :].T)
            Whh = Whh.at[:, g * G:g * G + H].set(w_hh[g * H:(g + 1) * H, :].T)
            b = b.at[0, g * G:g * G + H].set(
                b_ih[g * H:(g + 1) * H] + b_hh[g * H:(g + 1) * H])
        layers.append((Wih.astype(dtype), Whh.astype(dtype), b))
    w_fc, b_fc = raw["fc"]
    Wfc = jnp.zeros((H, Op), jnp.float32).at[:, :output_dim].set(w_fc.T).astype(dtype)
    bfc = jnp.zeros((1, Op), jnp.float32).at[0, :output_dim].set(b_fc)
    return {
        "layers": layers,
        "w_fc": Wfc,
        "b_fc": bfc,
        "dims": (input_dim, hidden_dim, num_layers, output_dim, Dp, G, GW, Op),
    }


# ----------------------------------------------------------------------------
# Pure-JAX reference (mirrors the PyTorch module) for correctness checking.
# ----------------------------------------------------------------------------
def reference_forward(x, raw, hidden_dim, num_layers):
    hp = lax.Precision.HIGHEST
    B, S, _ = x.shape
    H = hidden_dim
    hs = [jnp.zeros((B, H), jnp.float32) for _ in range(num_layers)]
    cs = [jnp.zeros((B, H), jnp.float32) for _ in range(num_layers)]
    for t in range(S):
        inp = x[:, t, :]
        for l in range(num_layers):
            w_ih, w_hh, b_ih, b_hh = raw["layers"][l]
            gates = (jnp.dot(inp, w_ih.T, precision=hp) + b_ih
                     + jnp.dot(hs[l], w_hh.T, precision=hp) + b_hh)
            i_g = jax.nn.sigmoid(gates[:, 0 * H:1 * H])
            f_g = jax.nn.sigmoid(gates[:, 1 * H:2 * H])
            g_g = jnp.tanh(gates[:, 2 * H:3 * H])
            o_g = jax.nn.sigmoid(gates[:, 3 * H:4 * H])
            cs[l] = f_g * cs[l] + i_g * g_g
            hs[l] = o_g * jnp.tanh(cs[l])
            inp = hs[l]
    w_fc, b_fc = raw["fc"]
    return jnp.dot(hs[-1], w_fc.T, precision=hp) + b_fc


# ----------------------------------------------------------------------------
if __name__ == "__main__":
    batch, seq_len = 2, 8
    input_dim, hidden_dim, num_layers, output_dim = 8, 32, 2, 1

    key = jax.random.PRNGKey(0)
    key, xkey = jax.random.split(key)
    x = jax.random.normal(xkey, (batch, seq_len, input_dim), jnp.float32)

    raw = init_raw_params(key, input_dim, hidden_dim, num_layers, output_dim)
    packed = pack_params(raw, input_dim, hidden_dim, num_layers, output_dim)

    out = lstm_forecaster_forward(x, packed)          # (batch, output_dim)
    jax.block_until_ready(out)
    assert out.shape == (batch, output_dim)

    ref = reference_forward(x, raw, hidden_dim, num_layers)
    assert jnp.allclose(out, ref, rtol=1e-3, atol=1e-3), (out, ref)

    print("KERNEL_OK")
</pallas_src>

<mosaic_0001>
module attributes {stable_mosaic.version = 11 : i64} {
  func.func @fused_lstm_fc_kernel(%arg0: memref<64x128xf32, #tpu.memory_space<vmem>>, %arg1: memref<128x128xf32, #tpu.memory_space<vmem>>, %arg2: memref<32x128xf32, #tpu.memory_space<vmem>>, %arg3: memref<1x128xf32, #tpu.memory_space<vmem>>, %arg4: memref<32x128xf32, #tpu.memory_space<vmem>>, %arg5: memref<32x128xf32, #tpu.memory_space<vmem>>, %arg6: memref<1x128xf32, #tpu.memory_space<vmem>>, %arg7: memref<32x128xf32, #tpu.memory_space<vmem>>, %arg8: memref<1x128xf32, #tpu.memory_space<vmem>>, %arg9: memref<8x128xf32, #tpu.memory_space<vmem>>, %arg10: memref<64x128xf32, #tpu.memory_space<vmem>>, %arg11: memref<64x32xf32, #tpu.memory_space<vmem>>) attributes {dimension_semantics = [], scalar_prefetch = 0 : i64, scratch_operands = 2 : i64, tpu.core_type = #tpu.core_type<tc>} {
    %0 = tpu.iota {dimensions = array<i32: 1>} : vector<8x128xi32>
    %c64_i32 = arith.constant 64 : i32
    %1 = vector.broadcast %c64_i32 : i32 to vector<8x128xi32>
    %2 = arith.cmpi sge, %0, %1 : vector<8x128xi32>
    %c96_i32 = arith.constant 96 : i32
    %3 = vector.broadcast %c96_i32 : i32 to vector<8x128xi32>
    %4 = arith.cmpi slt, %0, %3 : vector<8x128xi32>
    %5 = arith.andi %2, %4 : vector<8x128xi1>
    %c0 = arith.constant 0 : index
    %c0_0 = arith.constant 0 : index
    %6 = vector.load %arg0[%c0, %c0_0] : memref<64x128xf32, #tpu.memory_space<vmem>>, vector<64x128xf32>
    %c0_1 = arith.constant 0 : index
    %c0_2 = arith.constant 0 : index
    %7 = vector.load %arg1[%c0_1, %c0_2] : memref<128x128xf32, #tpu.memory_space<vmem>>, vector<128x128xf32>
    %cst = arith.constant dense<0.000000e+00> : vector<64x128xf32>
    %8 = tpu.matmul %6, %7, %cst {dimension_numbers = #tpu.dot_dimension_numbers<[1], [0], [0], [1], [0, 0, 1, 1], [], []>} : vector<64x128xf32>, vector<128x128xf32>, vector<64x128xf32> -> vector<64x128xf32>
    %c0_3 = arith.constant 0 : index
    %c0_4 = arith.constant 0 : index
    %9 = vector.load %arg3[%c0_3, %c0_4] : memref<1x128xf32, #tpu.memory_space<vmem>>, vector<1x128xf32>
    %10 = vector.broadcast %9 : vector<1x128xf32> to vector<64x128xf32>
    %11 = arith.addf %8, %10 : vector<64x128xf32>
    %c0_5 = arith.constant 0 : index
    %c0_6 = arith.constant 0 : index
    %12 = vector.load %arg10[%c0_5, %c0_6] : memref<64x128xf32, #tpu.memory_space<vmem>>, vector<64x128xf32>
    tpu.vector_store %arg10[%c0_5, %c0_6], %11 {strides = array<i32>} : memref<64x128xf32, #tpu.memory_space<vmem>>, vector<64x128xf32>,
    %cst_7 = arith.constant 0.000000e+00 : f32
    %13 = vector.broadcast %cst_7 : f32 to vector<8x32xf32>
    %cst_8 = arith.constant 0.000000e+00 : f32
    %14 = vector.broadcast %cst_8 : f32 to vector<8x32xf32>
    %c0_9 = arith.constant 0 : index
    %c0_10 = arith.constant 0 : index
    %15 = vector.load %arg10[%c0_9, %c0_10] : memref<64x128xf32, #tpu.memory_space<vmem>>, vector<8x128xf32>
    %c0_11 = arith.constant 0 : index
    %c0_12 = arith.constant 0 : index
    %16 = vector.load %arg2[%c0_11, %c0_12] : memref<32x128xf32, #tpu.memory_space<vmem>>, vector<32x128xf32>
    %cst_13 = arith.constant dense<0.000000e+00> : vector<8x128xf32>
    %17 = tpu.matmul %13, %16, %cst_13 {dimension_numbers = #tpu.dot_dimension_numbers<[1], [0], [0], [1], [0, 0, 1, 1], [], []>} : vector<8x32xf32>, vector<32x128xf32>, vector<8x128xf32> -> vector<8x128xf32>
    %18 = arith.addf %15, %17 : vector<8x128xf32>
    %cst_14 = arith.constant 5.000000e-01 : f32
    %19 = vector.broadcast %cst_14 : f32 to vector<8x128xf32>
    %20 = arith.mulf %19, %18 : vector<8x128xf32>
    %21 = arith.select %5, %18, %20 : vector<8x128xi1>, vector<8x128xf32>
    %22 = math.tanh %21 : vector<8x128xf32>
    %cst_15 = arith.constant 5.000000e-01 : f32
    %23 = vector.broadcast %cst_15 : f32 to vector<8x128xf32>
    %24 = arith.mulf %23, %22 : vector<8x128xf32>
    %cst_16 = arith.constant 5.000000e-01 : f32
    %25 = vector.broadcast %cst_16 : f32 to vector<8x128xf32>
    %26 = arith.addf %24, %25 : vector<8x128xf32>
    %27 = arith.select %5, %22, %26 : vector<8x128xi1>, vector<8x128xf32>
    %28 = vector.extract_strided_slice %27 {offsets = [0, 0], sizes = [8, 32], strides = [1, 1]} : vector<8x128xf32> to vector<8x32xf32>
    %29 = vector.extract_strided_slice %27 {offsets = [0, 32], sizes = [8, 32], strides = [1, 1]} : vector<8x128xf32> to vector<8x32xf32>
    %30 = vector.extract_strided_slice %27 {offsets = [0, 64], sizes = [8, 32], strides = [1, 1]} : vector<8x128xf32> to vector<8x32xf32>
    %31 = vector.extract_strided_slice %27 {offsets = [0, 96], sizes = [8, 32], strides = [1, 1]} : vector<8x128xf32> to vector<8x32xf32>
    %32 = arith.mulf %29, %14 : vector<8x32xf32>
    %33 = arith.mulf %28, %30 : vector<8x32xf32>
    %34 = arith.addf %32, %33 : vector<8x32xf32>
    %35 = math.tanh %34 : vector<8x32xf32>
    %36 = arith.mulf %31, %35 : vector<8x32xf32>
    %c0_17 = arith.constant 0 : index
    %c0_18 = arith.constant 0 : index
    %37 = vector.load %arg11[%c0_17, %c0_18] : memref<64x32xf32, #tpu.memory_space<vmem>>, vector<8x32xf32>
    tpu.vector_store %arg11[%c0_17, %c0_18], %36 {strides = array<i32>} : memref<64x32xf32, #tpu.memory_space<vmem>>, vector<8x32xf32>,
    %c8 = arith.constant 8 : index
    %c0_19 = arith.constant 0 : index
    %38 = vector.load %arg10[%c8, %c0_19] : memref<64x128xf32, #tpu.memory_space<vmem>>, vector<8x128xf32>
    %c0_20 = arith.constant 0 : index
    %c0_21 = arith.constant 0 : index
    %39 = vector.load %arg2[%c0_20, %c0_21] : memref<32x128xf32, #tpu.memory_space<vmem>>, vector<32x128xf32>
    %cst_22 = arith.constant dense<0.000000e+00> : vector<8x128xf32>
    %40 = tpu.matmul %36, %39, %cst_22 {dimension_numbers = #tpu.dot_dimension_numbers<[1], [0], [0], [1], [0, 0, 1, 1], [], []>} : vector<8x32xf32>, vector<32x128xf32>, vector<8x128xf32> -> vector<8x128xf32>
    %41 = arith.addf %38, %40 : vector<8x128xf32>
    %cst_23 = arith.constant 5.000000e-01 : f32
    %42 = vector.broadcast %cst_23 : f32 to vector<8x128xf32>
    %43 = arith.mulf %42, %41 : vector<8x128xf32>
    %44 = arith.select %5, %41, %43 : vector<8x128xi1>, vector<8x128xf32>
    %45 = math.tanh %44 : vector<8x128xf32>
    %cst_24 = arith.constant 5.000000e-01 : f32
    %46 = vector.broadcast %cst_24 : f32 to vector<8x128xf32>
    %47 = arith.mulf %46, %45 : vector<8x128xf32>
    %cst_25 = arith.constant 5.000000e-01 : f32
    %48 = vector.broadcast %cst_25 : f32 to vector<8x128xf32>
    %49 = arith.addf %47, %48 : vector<8x128xf32>
    %50 = arith.select %5, %45, %49 : vector<8x128xi1>, vector<8x128xf32>
    %51 = vector.extract_strided_slice %50 {offsets = [0, 0], sizes = [8, 32], strides = [1, 1]} : vector<8x128xf32> to vector<8x32xf32>
    %52 = vector.extract_strided_slice %50 {offsets = [0, 32], sizes = [8, 32], strides = [1, 1]} : vector<8x128xf32> to vector<8x32xf32>
    %53 = vector.extract_strided_slice %50 {offsets = [0, 64], sizes = [8, 32], strides = [1, 1]} : vector<8x128xf32> to vector<8x32xf32>
    %54 = vector.extract_strided_slice %50 {offsets = [0, 96], sizes = [8, 32], strides = [1, 1]} : vector<8x128xf32> to vector<8x32xf32>
    %55 = arith.mulf %52, %34 : vector<8x32xf32>
    %56 = arith.mulf %51, %53 : vector<8x32xf32>
    %57 = arith.addf %55, %56 : vector<8x32xf32>
    %58 = math.tanh %57 : vector<8x32xf32>
    %59 = arith.mulf %54, %58 : vector<8x32xf32>
    %c8_26 = arith.constant 8 : index
    %c0_27 = arith.constant 0 : index
    %60 = vector.load %arg11[%c8_26, %c0_27] : memref<64x32xf32, #tpu.memory_space<vmem>>, vector<8x32xf32>
    tpu.vector_store %arg11[%c8_26, %c0_27], %59 {strides = array<i32>} : memref<64x32xf32, #tpu.memory_space<vmem>>, vector<8x32xf32>,
    %c16 = arith.constant 16 : index
    %c0_28 = arith.constant 0 : index
    %61 = vector.load %arg10[%c16, %c0_28] : memref<64x128xf32, #tpu.memory_space<vmem>>, vector<8x128xf32>
    %c0_29 = arith.constant 0 : index
    %c0_30 = arith.constant 0 : index
    %62 = vector.load %arg2[%c0_29, %c0_30] : memref<32x128xf32, #tpu.memory_space<vmem>>, vector<32x128xf32>
    %cst_31 = arith.constant dense<0.000000e+00> : vector<8x128xf32>
    %63 = tpu.matmul %59, %62, %cst_31 {dimension_numbers = #tpu.dot_dimension_numbers<[1], [0], [0], [1], [0, 0, 1, 1], [], []>} : vector<8x32xf32>, vector<32x128xf32>, vector<8x128xf32> -> vector<8x128xf32>
    %64 = arith.addf %61, %63 : vector<8x128xf32>
    %cst_32 = arith.constant 5.000000e-01 : f32
    %65 = vector.broadcast %cst_32 : f32 to vector<8x128xf32>
    %66 = arith.mulf %65, %64 : vector<8x128xf32>
    %67 = arith.select %5, %64, %66 : vector<8x128xi1>, vector<8x128xf32>
    %68 = math.tanh %67 : vector<8x128xf32>
    %cst_33 = arith.constant 5.000000e-01 : f32
    %69 = vector.broadcast %cst_33 : f32 to vector<8x128xf32>
    %70 = arith.mulf %69, %68 : vector<8x128xf32>
    %cst_34 = arith.constant 5.000000e-01 : f32
    %71 = vector.broadcast %cst_34 : f32 to vector<8x128xf32>
    %72 = arith.addf %70, %71 : vector<8x128xf32>
    %73 = arith.select %5, %68, %72 : vector<8x128xi1>, vector<8x128xf32>
    %74 = vector.extract_strided_slice %73 {offsets = [0, 0], sizes = [8, 32], strides = [1, 1]} : vector<8x128xf32> to vector<8x32xf32>
    %75 = vector.extract_strided_slice %73 {offsets = [0, 32], sizes = [8, 32], strides = [1, 1]} : vector<8x128xf32> to vector<8x32xf32>
    %76 = vector.extract_strided_slice %73 {offsets = [0, 64], sizes = [8, 32], strides = [1, 1]} : vector<8x128xf32> to vector<8x32xf32>
    %77 = vector.extract_strided_slice %73 {offsets = [0, 96], sizes = [8, 32], strides = [1, 1]} : vector<8x128xf32> to vector<8x32xf32>
    %78 = arith.mulf %75, %57 : vector<8x32xf32>
    %79 = arith.mulf %74, %76 : vector<8x32xf32>
    %80 = arith.addf %78, %79 : vector<8x32xf32>
    %81 = math.tanh %80 : vector<8x32xf32>
    %82 = arith.mulf %77, %81 : vector<8x32xf32>
    %c16_35 = arith.constant 16 : index
    %c0_36 = arith.constant 0 : index
    %83 = vector.load %arg11[%c16_35, %c0_36] : memref<64x32xf32, #tpu.memory_space<vmem>>, vector<8x32xf32>
    tpu.vector_store %arg11[%c16_35, %c0_36], %82 {strides = array<i32>} : memref<64x32xf32, #tpu.memory_space<vmem>>, vector<8x32xf32>,
    %c24 = arith.constant 24 : index
    %c0_37 = arith.constant 0 : index
    %84 = vector.load %arg10[%c24, %c0_37] : memref<64x128xf32, #tpu.memory_space<vmem>>, vector<8x128xf32>
    %c0_38 = arith.constant 0 : index
    %c0_39 = arith.constant 0 : index
    %85 = vector.load %arg2[%c0_38, %c0_39] : memref<32x128xf32, #tpu.memory_space<vmem>>, vector<32x128xf32>
    %cst_40 = arith.constant dense<0.000000e+00> : vector<8x128xf32>
    %86 = tpu.matmul %82, %85, %cst_40 {dimension_numbers = #tpu.dot_dimension_numbers<[1], [0], [0], [1], [0, 0, 1, 1], [], []>} : vector<8x32xf32>, vector<32x128xf32>, vector<8x128xf32> -> vector<8x128xf32>
    %87 = arith.addf %84, %86 : vector<8x128xf32>
    %cst_41 = arith.constant 5.000000e-01 : f32
    %88 = vector.broadcast %cst_41 : f32 to vector<8x128xf32>
    %89 = arith.mulf %88, %87 : vector<8x128xf32>
    %90 = arith.select %5, %87, %89 : vector<8x128xi1>, vector<8x128xf32>
    %91 = math.tanh %90 : vector<8x128xf32>
    %cst_42 = arith.constant 5.000000e-01 : f32
    %92 = vector.broadcast %cst_42 : f32 to vector<8x128xf32>
    %93 = arith.mulf %92, %91 : vector<8x128xf32>
    %cst_43 = arith.constant 5.000000e-01 : f32
    %94 = vector.broadcast %cst_43 : f32 to vector<8x128xf32>
    %95 = arith.addf %93, %94 : vector<8x128xf32>
    %96 = arith.select %5, %91, %95 : vector<8x128xi1>, vector<8x128xf32>
    %97 = vector.extract_strided_slice %96 {offsets = [0, 0], sizes = [8, 32], strides = [1, 1]} : vector<8x128xf32> to vector<8x32xf32>
    %98 = vector.extract_strided_slice %96 {offsets = [0, 32], sizes = [8, 32], strides = [1, 1]} : vector<8x128xf32> to vector<8x32xf32>
    %99 = vector.extract_strided_slice %96 {offsets = [0, 64], sizes = [8, 32], strides = [1, 1]} : vector<8x128xf32> to vector<8x32xf32>
    %100 = vector.extract_strided_slice %96 {offsets = [0, 96], sizes = [8, 32], strides = [1, 1]} : vector<8x128xf32> to vector<8x32xf32>
    %101 = arith.mulf %98, %80 : vector<8x32xf32>
    %102 = arith.mulf %97, %99 : vector<8x32xf32>
    %103 = arith.addf %101, %102 : vector<8x32xf32>
    %104 = math.tanh %103 : vector<8x32xf32>
    %105 = arith.mulf %100, %104 : vector<8x32xf32>
    %c24_44 = arith.constant 24 : index
    %c0_45 = arith.constant 0 : index
    %106 = vector.load %arg11[%c24_44, %c0_45] : memref<64x32xf32, #tpu.memory_space<vmem>>, vector<8x32xf32>
    tpu.vector_store %arg11[%c24_44, %c0_45], %105 {strides = array<i32>} : memref<64x32xf32, #tpu.memory_space<vmem>>, vector<8x32xf32>,
    %c32 = arith.constant 32 : index
    %c0_46 = arith.constant 0 : index
    %107 = vector.load %arg10[%c32, %c0_46] : memref<64x128xf32, #tpu.memory_space<vmem>>, vector<8x128xf32>
    %c0_47 = arith.constant 0 : index
    %c0_48 = arith.constant 0 : index
    %108 = vector.load %arg2[%c0_47, %c0_48] : memref<32x128xf32, #tpu.memory_space<vmem>>, vector<32x128xf32>
    %cst_49 = arith.constant dense<0.000000e+00> : vector<8x128xf32>
    %109 = tpu.matmul %105, %108, %cst_49 {dimension_numbers = #tpu.dot_dimension_numbers<[1], [0], [0], [1], [0, 0, 1, 1], [], []>} : vector<8x32xf32>, vector<32x128xf32>, vector<8x128xf32> -> vector<8x128xf32>
    %110 = arith.addf %107, %109 : vector<8x128xf32>
    %cst_50 = arith.constant 5.000000e-01 : f32
    %111 = vector.broadcast %cst_50 : f32 to vector<8x128xf32>
    %112 = arith.mulf %111, %110 : vector<8x128xf32>
    %113 = arith.select %5, %110, %112 : vector<8x128xi1>, vector<8x128xf32>
    %114 = math.tanh %113 : vector<8x128xf32>
    %cst_51 = arith.constant 5.000000e-01 : f32
    %115 = vector.broadcast %cst_51 : f32 to vector<8x128xf32>
    %116 = arith.mulf %115, %114 : vector<8x128xf32>
    %cst_52 = arith.constant 5.000000e-01 : f32
    %117 = vector.broadcast %cst_52 : f32 to vector<8x128xf32>
    %118 = arith.addf %116, %117 : vector<8x128xf32>
    %119 = arith.select %5, %114, %118 : vector<8x128xi1>, vector<8x128xf32>
    %120 = vector.extract_strided_slice %119 {offsets = [0, 0], sizes = [8, 32], strides = [1, 1]} : vector<8x128xf32> to vector<8x32xf32>
    %121 = vector.extract_strided_slice %119 {offsets = [0, 32], sizes = [8, 32], strides = [1, 1]} : vector<8x128xf32> to vector<8x32xf32>
    %122 = vector.extract_strided_slice %119 {offsets = [0, 64], sizes = [8, 32], strides = [1, 1]} : vector<8x128xf32> to vector<8x32xf32>
    %123 = vector.extract_strided_slice %119 {offsets = [0, 96], sizes = [8, 32], strides = [1, 1]} : vector<8x128xf32> to vector<8x32xf32>
    %124 = arith.mulf %121, %103 : vector<8x32xf32>
    %125 = arith.mulf %120, %122 : vector<8x32xf32>
    %126 = arith.addf %124, %125 : vector<8x32xf32>
    %127 = math.tanh %126 : vector<8x32xf32>
    %128 = arith.mulf %123, %127 : vector<8x32xf32>
    %c32_53 = arith.constant 32 : index
    %c0_54 = arith.constant 0 : index
    %129 = vector.load %arg11[%c32_53, %c0_54] : memref<64x32xf32, #tpu.memory_space<vmem>>, vector<8x32xf32>
    tpu.vector_store %arg11[%c32_53, %c0_54], %128 {strides = array<i32>} : memref<64x32xf32, #tpu.memory_space<vmem>>, vector<8x32xf32>,
    %c40 = arith.constant 40 : index
    %c0_55 = arith.constant 0 : index
    %130 = vector.load %arg10[%c40, %c0_55] : memref<64x128xf32, #tpu.memory_space<vmem>>, vector<8x128xf32>
    %c0_56 = arith.constant 0 : index
    %c0_57 = arith.constant 0 : index
    %131 = vector.load %arg2[%c0_56, %c0_57] : memref<32x128xf32, #tpu.memory_space<vmem>>, vector<32x128xf32>
    %cst_58 = arith.constant dense<0.000000e+00> : vector<8x128xf32>
    %132 = tpu.matmul %128, %131, %cst_58 {dimension_numbers = #tpu.dot_dimension_numbers<[1], [0], [0], [1], [0, 0, 1, 1], [], []>} : vector<8x32xf32>, vector<32x128xf32>, vector<8x128xf32> -> vector<8x128xf32>
    %133 = arith.addf %130, %132 : vector<8x128xf32>
    %cst_59 = arith.constant 5.000000e-01 : f32
    %134 = vector.broadcast %cst_59 : f32 to vector<8x128xf32>
    %135 = arith.mulf %134, %133 : vector<8x128xf32>
    %136 = arith.select %5, %133, %135 : vector<8x128xi1>, vector<8x128xf32>
    %137 = math.tanh %136 : vector<8x128xf32>
    %cst_60 = arith.constant 5.000000e-01 : f32
    %138 = vector.broadcast %cst_60 : f32 to vector<8x128xf32>
    %139 = arith.mulf %138, %137 : vector<8x128xf32>
    %cst_61 = arith.constant 5.000000e-01 : f32
    %140 = vector.broadcast %cst_61 : f32 to vector<8x128xf32>
    %141 = arith.addf %139, %140 : vector<8x128xf32>
    %142 = arith.select %5, %137, %141 : vector<8x128xi1>, vector<8x128xf32>
    %143 = vector.extract_strided_slice %142 {offsets = [0, 0], sizes = [8, 32], strides = [1, 1]} : vector<8x128xf32> to vector<8x32xf32>
    %144 = vector.extract_strided_slice %142 {offsets = [0, 32], sizes = [8, 32], strides = [1, 1]} : vector<8x128xf32> to vector<8x32xf32>
    %145 = vector.extract_strided_slice %142 {offsets = [0, 64], sizes = [8, 32], strides = [1, 1]} : vector<8x128xf32> to vector<8x32xf32>
    %146 = vector.extract_strided_slice %142 {offsets = [0, 96], sizes = [8, 32], strides = [1, 1]} : vector<8x128xf32> to vector<8x32xf32>
    %147 = arith.mulf %144, %126 : vector<8x32xf32>
    %148 = arith.mulf %143, %145 : vector<8x32xf32>
    %149 = arith.addf %147, %148 : vector<8x32xf32>
    %150 = math.tanh %149 : vector<8x32xf32>
    %151 = arith.mulf %146, %150 : vector<8x32xf32>
    %c40_62 = arith.constant 40 : index
    %c0_63 = arith.constant 0 : index
    %152 = vector.load %arg11[%c40_62, %c0_63] : memref<64x32xf32, #tpu.memory_space<vmem>>, vector<8x32xf32>
    tpu.vector_store %arg11[%c40_62, %c0_63], %151 {strides = array<i32>} : memref<64x32xf32, #tpu.memory_space<vmem>>, vector<8x32xf32>,
    %c48 = arith.constant 48 : index
    %c0_64 = arith.constant 0 : index
    %153 = vector.load %arg10[%c48, %c0_64] : memref<64x128xf32, #tpu.memory_space<vmem>>, vector<8x128xf32>
    %c0_65 = arith.constant 0 : index
    %c0_66 = arith.constant 0 : index
    %154 = vector.load %arg2[%c0_65, %c0_66] : memref<32x128xf32, #tpu.memory_space<vmem>>, vector<32x128xf32>
    %cst_67 = arith.constant dense<0.000000e+00> : vector<8x128xf32>
    %155 = tpu.matmul %151, %154, %cst_67 {dimension_numbers = #tpu.dot_dimension_numbers<[1], [0], [0], [1], [0, 0, 1, 1], [], []>} : vector<8x32xf32>, vector<32x128xf32>, vector<8x128xf32> -> vector<8x128xf32>
    %156 = arith.addf %153, %155 : vector<8x128xf32>
    %cst_68 = arith.constant 5.000000e-01 : f32
    %157 = vector.broadcast %cst_68 : f32 to vector<8x128xf32>
    %158 = arith.mulf %157, %156 : vector<8x128xf32>
    %159 = arith.select %5, %156, %158 : vector<8x128xi1>, vector<8x128xf32>
    %160 = math.tanh %159 : vector<8x128xf32>
    %cst_69 = arith.constant 5.000000e-01 : f32
    %161 = vector.broadcast %cst_69 : f32 to vector<8x128xf32>
    %162 = arith.mulf %161, %160 : vector<8x128xf32>
    %cst_70 = arith.constant 5.000000e-01 : f32
    %163 = vector.broadcast %cst_70 : f32 to vector<8x128xf32>
    %164 = arith.addf %162, %163 : vector<8x128xf32>
    %165 = arith.select %5, %160, %164 : vector<8x128xi1>, vector<8x128xf32>
    %166 = vector.extract_strided_slice %165 {offsets = [0, 0], sizes = [8, 32], strides = [1, 1]} : vector<8x128xf32> to vector<8x32xf32>
    %167 = vector.extract_strided_slice %165 {offsets = [0, 32], sizes = [8, 32], strides = [1, 1]} : vector<8x128xf32> to vector<8x32xf32>
    %168 = vector.extract_strided_slice %165 {offsets = [0, 64], sizes = [8, 32], strides = [1, 1]} : vector<8x128xf32> to vector<8x32xf32>
    %169 = vector.extract_strided_slice %165 {offsets = [0, 96], sizes = [8, 32], strides = [1, 1]} : vector<8x128xf32> to vector<8x32xf32>
    %170 = arith.mulf %167, %149 : vector<8x32xf32>
    %171 = arith.mulf %166, %168 : vector<8x32xf32>
    %172 = arith.addf %170, %171 : vector<8x32xf32>
    %173 = math.tanh %172 : vector<8x32xf32>
    %174 = arith.mulf %169, %173 : vector<8x32xf32>
    %c48_71 = arith.constant 48 : index
    %c0_72 = arith.constant 0 : index
    %175 = vector.load %arg11[%c48_71, %c0_72] : memref<64x32xf32, #tpu.memory_space<vmem>>, vector<8x32xf32>
    tpu.vector_store %arg11[%c48_71, %c0_72], %174 {strides = array<i32>} : memref<64x32xf32, #tpu.memory_space<vmem>>, vector<8x32xf32>,
    %c56 = arith.constant 56 : index
    %c0_73 = arith.constant 0 : index
    %176 = vector.load %arg10[%c56, %c0_73] : memref<64x128xf32, #tpu.memory_space<vmem>>, vector<8x128xf32>
    %c0_74 = arith.constant 0 : index
    %c0_75 = arith.constant 0 : index
    %177 = vector.load %arg2[%c0_74, %c0_75] : memref<32x128xf32, #tpu.memory_space<vmem>>, vector<32x128xf32>
    %cst_76 = arith.constant dense<0.000000e+00> : vector<8x128xf32>
    %178 = tpu.matmul %174, %177, %cst_76 {dimension_numbers = #tpu.dot_dimension_numbers<[1], [0], [0], [1], [0, 0, 1, 1], [], []>} : vector<8x32xf32>, vector<32x128xf32>, vector<8x128xf32> -> vector<8x128xf32>
    %179 = arith.addf %176, %178 : vector<8x128xf32>
    %cst_77 = arith.constant 5.000000e-01 : f32
    %180 = vector.broadcast %cst_77 : f32 to vector<8x128xf32>
    %181 = arith.mulf %180, %179 : vector<8x128xf32>
    %182 = arith.select %5, %179, %181 : vector<8x128xi1>, vector<8x128xf32>
    %183 = math.tanh %182 : vector<8x128xf32>
    %cst_78 = arith.constant 5.000000e-01 : f32
    %184 = vector.broadcast %cst_78 : f32 to vector<8x128xf32>
    %185 = arith.mulf %184, %183 : vector<8x128xf32>
    %cst_79 = arith.constant 5.000000e-01 : f32
    %186 = vector.broadcast %cst_79 : f32 to vector<8x128xf32>
    %187 = arith.addf %185, %186 : vector<8x128xf32>
    %188 = arith.select %5, %183, %187 : vector<8x128xi1>, vector<8x128xf32>
    %189 = vector.extract_strided_slice %188 {offsets = [0, 0], sizes = [8, 32], strides = [1, 1]} : vector<8x128xf32> to vector<8x32xf32>
    %190 = vector.extract_strided_slice %188 {offsets = [0, 32], sizes = [8, 32], strides = [1, 1]} : vector<8x128xf32> to vector<8x32xf32>
    %191 = vector.extract_strided_slice %188 {offsets = [0, 64], sizes = [8, 32], strides = [1, 1]} : vector<8x128xf32> to vector<8x32xf32>
    %192 = vector.extract_strided_slice %188 {offsets = [0, 96], sizes = [8, 32], strides = [1, 1]} : vector<8x128xf32> to vector<8x32xf32>
    %193 = arith.mulf %190, %172 : vector<8x32xf32>
    %194 = arith.mulf %189, %191 : vector<8x32xf32>
    %195 = arith.addf %193, %194 : vector<8x32xf32>
    %196 = math.tanh %195 : vector<8x32xf32>
    %197 = arith.mulf %192, %196 : vector<8x32xf32>
    %c56_80 = arith.constant 56 : index
    %c0_81 = arith.constant 0 : index
    %198 = vector.load %arg11[%c56_80, %c0_81] : memref<64x32xf32, #tpu.memory_space<vmem>>, vector<8x32xf32>
    tpu.vector_store %arg11[%c56_80, %c0_81], %197 {strides = array<i32>} : memref<64x32xf32, #tpu.memory_space<vmem>>, vector<8x32xf32>,
    %c0_82 = arith.constant 0 : index
    %c0_83 = arith.constant 0 : index
    %199 = vector.load %arg11[%c0_82, %c0_83] : memref<64x32xf32, #tpu.memory_space<vmem>>, vector<64x32xf32>
    %c0_84 = arith.constant 0 : index
    %c0_85 = arith.constant 0 : index
    %200 = vector.load %arg4[%c0_84, %c0_85] : memref<32x128xf32, #tpu.memory_space<vmem>>, vector<32x128xf32>
    %cst_86 = arith.constant dense<0.000000e+00> : vector<64x128xf32>
    %201 = tpu.matmul %199, %200, %cst_86 {dimension_numbers = #tpu.dot_dimension_numbers<[1], [0], [0], [1], [0, 0, 1, 1], [], []>} : vector<64x32xf32>, vector<32x128xf32>, vector<64x128xf32> -> vector<64x128xf32>
    %c0_87 = arith.constant 0 : index
    %c0_88 = arith.constant 0 : index
    %202 = vector.load %arg6[%c0_87, %c0_88] : memref<1x128xf32, #tpu.memory_space<vmem>>, vector<1x128xf32>
    %203 = vector.broadcast %202 : vector<1x128xf32> to vector<64x128xf32>
    %204 = arith.addf %201, %203 : vector<64x128xf32>
    %c0_89 = arith.constant 0 : index
    %c0_90 = arith.constant 0 : index
    %205 = vector.load %arg10[%c0_89, %c0_90] : memref<64x128xf32, #tpu.memory_space<vmem>>, vector<64x128xf32>
    tpu.vector_store %arg10[%c0_89, %c0_90], %204 {strides = array<i32>} : memref<64x128xf32, #tpu.memory_space<vmem>>, vector<64x128xf32>,
    %cst_91 = arith.constant 0.000000e+00 : f32
    %206 = vector.broadcast %cst_91 : f32 to vector<8x32xf32>
    %cst_92 = arith.constant 0.000000e+00 : f32
    %207 = vector.broadcast %cst_92 : f32 to vector<8x32xf32>
    %c0_93 = arith.constant 0 : index
    %c0_94 = arith.constant 0 : index
    %208 = vector.load %arg10[%c0_93, %c0_94] : memref<64x128xf32, #tpu.memory_space<vmem>>, vector<8x128xf32>
    %c0_95 = arith.constant 0 : index
    %c0_96 = arith.constant 0 : index
    %209 = vector.load %arg5[%c0_95, %c0_96] : memref<32x128xf32, #tpu.memory_space<vmem>>, vector<32x128xf32>
    %cst_97 = arith.constant dense<0.000000e+00> : vector<8x128xf32>
    %210 = tpu.matmul %206, %209, %cst_97 {dimension_numbers = #tpu.dot_dimension_numbers<[1], [0], [0], [1], [0, 0, 1, 1], [], []>} : vector<8x32xf32>, vector<32x128xf32>, vector<8x128xf32> -> vector<8x128xf32>
    %211 = arith.addf %208, %210 : vector<8x128xf32>
    %cst_98 = arith.constant 5.000000e-01 : f32
    %212 = vector.broadcast %cst_98 : f32 to vector<8x128xf32>
    %213 = arith.mulf %212, %211 : vector<8x128xf32>
    %214 = arith.select %5, %211, %213 : vector<8x128xi1>, vector<8x128xf32>
    %215 = math.tanh %214 : vector<8x128xf32>
    %cst_99 = arith.constant 5.000000e-01 : f32
    %216 = vector.broadcast %cst_99 : f32 to vector<8x128xf32>
    %217 = arith.mulf %216, %215 : vector<8x128xf32>
    %cst_100 = arith.constant 5.000000e-01 : f32
    %218 = vector.broadcast %cst_100 : f32 to vector<8x128xf32>
    %219 = arith.addf %217, %218 : vector<8x128xf32>
    %220 = arith.select %5, %215, %219 : vector<8x128xi1>, vector<8x128xf32>
    %221 = vector.extract_strided_slice %220 {offsets = [0, 0], sizes = [8, 32], strides = [1, 1]} : vector<8x128xf32> to vector<8x32xf32>
    %222 = vector.extract_strided_slice %220 {offsets = [0, 32], sizes = [8, 32], strides = [1, 1]} : vector<8x128xf32> to vector<8x32xf32>
    %223 = vector.extract_strided_slice %220 {offsets = [0, 64], sizes = [8, 32], strides = [1, 1]} : vector<8x128xf32> to vector<8x32xf32>
    %224 = vector.extract_strided_slice %220 {offsets = [0, 96], sizes = [8, 32], strides = [1, 1]} : vector<8x128xf32> to vector<8x32xf32>
    %225 = arith.mulf %222, %207 : vector<8x32xf32>
    %226 = arith.mulf %221, %223 : vector<8x32xf32>
    %227 = arith.addf %225, %226 : vector<8x32xf32>
    %228 = math.tanh %227 : vector<8x32xf32>
    %229 = arith.mulf %224, %228 : vector<8x32xf32>
    %c8_101 = arith.constant 8 : index
    %c0_102 = arith.constant 0 : index
    %230 = vector.load %arg10[%c8_101, %c0_102] : memref<64x128xf32, #tpu.memory_space<vmem>>, vector<8x128xf32>
    %c0_103 = arith.constant 0 : index
    %c0_104 = arith.constant 0 : index
    %231 = vector.load %arg5[%c0_103, %c0_104] : memref<32x128xf32, #tpu.memory_space<vmem>>, vector<32x128xf32>
    %cst_105 = arith.constant dense<0.000000e+00> : vector<8x128xf32>
    %232 = tpu.matmul %229, %231, %cst_105 {dimension_numbers = #tpu.dot_dimension_numbers<[1], [0], [0], [1], [0, 0, 1, 1], [], []>} : vector<8x32xf32>, vector<32x128xf32>, vector<8x128xf32> -> vector<8x128xf32>
    %233 = arith.addf %230, %232 : vector<8x128xf32>
    %cst_106 = arith.constant 5.000000e-01 : f32
    %234 = vector.broadcast %cst_106 : f32 to vector<8x128xf32>
    %235 = arith.mulf %234, %233 : vector<8x128xf32>
    %236 = arith.select %5, %233, %235 : vector<8x128xi1>, vector<8x128xf32>
    %237 = math.tanh %236 : vector<8x128xf32>
    %cst_107 = arith.constant 5.000000e-01 : f32
    %238 = vector.broadcast %cst_107 : f32 to vector<8x128xf32>
    %239 = arith.mulf %238, %237 : vector<8x128xf32>
    %cst_108 = arith.constant 5.000000e-01 : f32
    %240 = vector.broadcast %cst_108 : f32 to vector<8x128xf32>
    %241 = arith.addf %239, %240 : vector<8x128xf32>
    %242 = arith.select %5, %237, %241 : vector<8x128xi1>, vector<8x128xf32>
    %243 = vector.extract_strided_slice %242 {offsets = [0, 0], sizes = [8, 32], strides = [1, 1]} : vector<8x128xf32> to vector<8x32xf32>
    %244 = vector.extract_strided_slice %242 {offsets = [0, 32], sizes = [8, 32], strides = [1, 1]} : vector<8x128xf32> to vector<8x32xf32>
    %245 = vector.extract_strided_slice %242 {offsets = [0, 64], sizes = [8, 32], strides = [1, 1]} : vector<8x128xf32> to vector<8x32xf32>
    %246 = vector.extract_strided_slice %242 {offsets = [0, 96], sizes = [8, 32], strides = [1, 1]} : vector<8x128xf32> to vector<8x32xf32>
    %247 = arith.mulf %244, %227 : vector<8x32xf32>
    %248 = arith.mulf %243, %245 : vector<8x32xf32>
    %249 = arith.addf %247, %248 : vector<8x32xf32>
    %250 = math.tanh %249 : vector<8x32xf32>
    %251 = arith.mulf %246, %250 : vector<8x32xf32>
    %c16_109 = arith.constant 16 : index
    %c0_110 = arith.constant 0 : index
    %252 = vector.load %arg10[%c16_109, %c0_110] : memref<64x128xf32, #tpu.memory_space<vmem>>, vector<8x128xf32>
    %c0_111 = arith.constant 0 : index
    %c0_112 = arith.constant 0 : index
    %253 = vector.load %arg5[%c0_111, %c0_112] : memref<32x128xf32, #tpu.memory_space<vmem>>, vector<32x128xf32>
    %cst_113 = arith.constant dense<0.000000e+00> : vector<8x128xf32>
    %254 = tpu.matmul %251, %253, %cst_113 {dimension_numbers = #tpu.dot_dimension_numbers<[1], [0], [0], [1], [0, 0, 1, 1], [], []>} : vector<8x32xf32>, vector<32x128xf32>, vector<8x128xf32> -> vector<8x128xf32>
    %255 = arith.addf %252, %254 : vector<8x128xf32>
    %cst_114 = arith.constant 5.000000e-01 : f32
    %256 = vector.broadcast %cst_114 : f32 to vector<8x128xf32>
    %257 = arith.mulf %256, %255 : vector<8x128xf32>
    %258 = arith.select %5, %255, %257 : vector<8x128xi1>, vector<8x128xf32>
    %259 = math.tanh %258 : vector<8x128xf32>
    %cst_115 = arith.constant 5.000000e-01 : f32
    %260 = vector.broadcast %cst_115 : f32 to vector<8x128xf32>
    %261 = arith.mulf %260, %259 : vector<8x128xf32>
    %cst_116 = arith.constant 5.000000e-01 : f32
    %262 = vector.broadcast %cst_116 : f32 to vector<8x128xf32>
    %263 = arith.addf %261, %262 : vector<8x128xf32>
    %264 = arith.select %5, %259, %263 : vector<8x128xi1>, vector<8x128xf32>
    %265 = vector.extract_strided_slice %264 {offsets = [0, 0], sizes = [8, 32], strides = [1, 1]} : vector<8x128xf32> to vector<8x32xf32>
    %266 = vector.extract_strided_slice %264 {offsets = [0, 32], sizes = [8, 32], strides = [1, 1]} : vector<8x128xf32> to vector<8x32xf32>
    %267 = vector.extract_strided_slice %264 {offsets = [0, 64], sizes = [8, 32], strides = [1, 1]} : vector<8x128xf32> to vector<8x32xf32>
    %268 = vector.extract_strided_slice %264 {offsets = [0, 96], sizes = [8, 32], strides = [1, 1]} : vector<8x128xf32> to vector<8x32xf32>
    %269 = arith.mulf %266, %249 : vector<8x32xf32>
    %270 = arith.mulf %265, %267 : vector<8x32xf32>
    %271 = arith.addf %269, %270 : vector<8x32xf32>
    %272 = math.tanh %271 : vector<8x32xf32>
    %273 = arith.mulf %268, %272 : vector<8x32xf32>
    %c24_117 = arith.constant 24 : index
    %c0_118 = arith.constant 0 : index
    %274 = vector.load %arg10[%c24_117, %c0_118] : memref<64x128xf32, #tpu.memory_space<vmem>>, vector<8x128xf32>
    %c0_119 = arith.constant 0 : index
    %c0_120 = arith.constant 0 : index
    %275 = vector.load %arg5[%c0_119, %c0_120] : memref<32x128xf32, #tpu.memory_space<vmem>>, vector<32x128xf32>
    %cst_121 = arith.constant dense<0.000000e+00> : vector<8x128xf32>
    %276 = tpu.matmul %273, %275, %cst_121 {dimension_numbers = #tpu.dot_dimension_numbers<[1], [0], [0], [1], [0, 0, 1, 1], [], []>} : vector<8x32xf32>, vector<32x128xf32>, vector<8x128xf32> -> vector<8x128xf32>
    %277 = arith.addf %274, %276 : vector<8x128xf32>
    %cst_122 = arith.constant 5.000000e-01 : f32
    %278 = vector.broadcast %cst_122 : f32 to vector<8x128xf32>
    %279 = arith.mulf %278, %277 : vector<8x128xf32>
    %280 = arith.select %5, %277, %279 : vector<8x128xi1>, vector<8x128xf32>
    %281 = math.tanh %280 : vector<8x128xf32>
    %cst_123 = arith.constant 5.000000e-01 : f32
    %282 = vector.broadcast %cst_123 : f32 to vector<8x128xf32>
    %283 = arith.mulf %282, %281 : vector<8x128xf32>
    %cst_124 = arith.constant 5.000000e-01 : f32
    %284 = vector.broadcast %cst_124 : f32 to vector<8x128xf32>
    %285 = arith.addf %283, %284 : vector<8x128xf32>
    %286 = arith.select %5, %281, %285 : vector<8x128xi1>, vector<8x128xf32>
    %287 = vector.extract_strided_slice %286 {offsets = [0, 0], sizes = [8, 32], strides = [1, 1]} : vector<8x128xf32> to vector<8x32xf32>
    %288 = vector.extract_strided_slice %286 {offsets = [0, 32], sizes = [8, 32], strides = [1, 1]} : vector<8x128xf32> to vector<8x32xf32>
    %289 = vector.extract_strided_slice %286 {offsets = [0, 64], sizes = [8, 32], strides = [1, 1]} : vector<8x128xf32> to vector<8x32xf32>
    %290 = vector.extract_strided_slice %286 {offsets = [0, 96], sizes = [8, 32], strides = [1, 1]} : vector<8x128xf32> to vector<8x32xf32>
    %291 = arith.mulf %288, %271 : vector<8x32xf32>
    %292 = arith.mulf %287, %289 : vector<8x32xf32>
    %293 = arith.addf %291, %292 : vector<8x32xf32>
    %294 = math.tanh %293 : vector<8x32xf32>
    %295 = arith.mulf %290, %294 : vector<8x32xf32>
    %c32_125 = arith.constant 32 : index
    %c0_126 = arith.constant 0 : index
    %296 = vector.load %arg10[%c32_125, %c0_126] : memref<64x128xf32, #tpu.memory_space<vmem>>, vector<8x128xf32>
    %c0_127 = arith.constant 0 : index
    %c0_128 = arith.constant 0 : index
    %297 = vector.load %arg5[%c0_127, %c0_128] : memref<32x128xf32, #tpu.memory_space<vmem>>, vector<32x128xf32>
    %cst_129 = arith.constant dense<0.000000e+00> : vector<8x128xf32>
    %298 = tpu.matmul %295, %297, %cst_129 {dimension_numbers = #tpu.dot_dimension_numbers<[1], [0], [0], [1], [0, 0, 1, 1], [], []>} : vector<8x32xf32>, vector<32x128xf32>, vector<8x128xf32> -> vector<8x128xf32>
    %299 = arith.addf %296, %298 : vector<8x128xf32>
    %cst_130 = arith.constant 5.000000e-01 : f32
    %300 = vector.broadcast %cst_130 : f32 to vector<8x128xf32>
    %301 = arith.mulf %300, %299 : vector<8x128xf32>
    %302 = arith.select %5, %299, %301 : vector<8x128xi1>, vector<8x128xf32>
    %303 = math.tanh %302 : vector<8x128xf32>
    %cst_131 = arith.constant 5.000000e-01 : f32
    %304 = vector.broadcast %cst_131 : f32 to vector<8x128xf32>
    %305 = arith.mulf %304, %303 : vector<8x128xf32>
    %cst_132 = arith.constant 5.000000e-01 : f32
    %306 = vector.broadcast %cst_132 : f32 to vector<8x128xf32>
    %307 = arith.addf %305, %306 : vector<8x128xf32>
    %308 = arith.select %5, %303, %307 : vector<8x128xi1>, vector<8x128xf32>
    %309 = vector.extract_strided_slice %308 {offsets = [0, 0], sizes = [8, 32], strides = [1, 1]} : vector<8x128xf32> to vector<8x32xf32>
    %310 = vector.extract_strided_slice %308 {offsets = [0, 32], sizes = [8, 32], strides = [1, 1]} : vector<8x128xf32> to vector<8x32xf32>
    %311 = vector.extract_strided_slice %308 {offsets = [0, 64], sizes = [8, 32], strides = [1, 1]} : vector<8x128xf32> to vector<8x32xf32>
    %312 = vector.extract_strided_slice %308 {offsets = [0, 96], sizes = [8, 32], strides = [1, 1]} : vector<8x128xf32> to vector<8x32xf32>
    %313 = arith.mulf %310, %293 : vector<8x32xf32>
    %314 = arith.mulf %309, %311 : vector<8x32xf32>
    %315 = arith.addf %313, %314 : vector<8x32xf32>
    %316 = math.tanh %315 : vector<8x32xf32>
    %317 = arith.mulf %312, %316 : vector<8x32xf32>
    %c40_133 = arith.constant 40 : index
    %c0_134 = arith.constant 0 : index
    %318 = vector.load %arg10[%c40_133, %c0_134] : memref<64x128xf32, #tpu.memory_space<vmem>>, vector<8x128xf32>
    %c0_135 = arith.constant 0 : index
    %c0_136 = arith.constant 0 : index
    %319 = vector.load %arg5[%c0_135, %c0_136] : memref<32x128xf32, #tpu.memory_space<vmem>>, vector<32x128xf32>
    %cst_137 = arith.constant dense<0.000000e+00> : vector<8x128xf32>
    %320 = tpu.matmul %317, %319, %cst_137 {dimension_numbers = #tpu.dot_dimension_numbers<[1], [0], [0], [1], [0, 0, 1, 1], [], []>} : vector<8x32xf32>, vector<32x128xf32>, vector<8x128xf32> -> vector<8x128xf32>
    %321 = arith.addf %318, %320 : vector<8x128xf32>
    %cst_138 = arith.constant 5.000000e-01 : f32
    %322 = vector.broadcast %cst_138 : f32 to vector<8x128xf32>
    %323 = arith.mulf %322, %321 : vector<8x128xf32>
    %324 = arith.select %5, %321, %323 : vector<8x128xi1>, vector<8x128xf32>
    %325 = math.tanh %324 : vector<8x128xf32>
    %cst_139 = arith.constant 5.000000e-01 : f32
    %326 = vector.broadcast %cst_139 : f32 to vector<8x128xf32>
    %327 = arith.mulf %326, %325 : vector<8x128xf32>
    %cst_140 = arith.constant 5.000000e-01 : f32
    %328 = vector.broadcast %cst_140 : f32 to vector<8x128xf32>
    %329 = arith.addf %327, %328 : vector<8x128xf32>
    %330 = arith.select %5, %325, %329 : vector<8x128xi1>, vector<8x128xf32>
    %331 = vector.extract_strided_slice %330 {offsets = [0, 0], sizes = [8, 32], strides = [1, 1]} : vector<8x128xf32> to vector<8x32xf32>
    %332 = vector.extract_strided_slice %330 {offsets = [0, 32], sizes = [8, 32], strides = [1, 1]} : vector<8x128xf32> to vector<8x32xf32>
    %333 = vector.extract_strided_slice %330 {offsets = [0, 64], sizes = [8, 32], strides = [1, 1]} : vector<8x128xf32> to vector<8x32xf32>
    %334 = vector.extract_strided_slice %330 {offsets = [0, 96], sizes = [8, 32], strides = [1, 1]} : vector<8x128xf32> to vector<8x32xf32>
    %335 = arith.mulf %332, %315 : vector<8x32xf32>
    %336 = arith.mulf %331, %333 : vector<8x32xf32>
    %337 = arith.addf %335, %336 : vector<8x32xf32>
    %338 = math.tanh %337 : vector<8x32xf32>
    %339 = arith.mulf %334, %338 : vector<8x32xf32>
    %c48_141 = arith.constant 48 : index
    %c0_142 = arith.constant 0 : index
    %340 = vector.load %arg10[%c48_141, %c0_142] : memref<64x128xf32, #tpu.memory_space<vmem>>, vector<8x128xf32>
    %c0_143 = arith.constant 0 : index
    %c0_144 = arith.constant 0 : index
    %341 = vector.load %arg5[%c0_143, %c0_144] : memref<32x128xf32, #tpu.memory_space<vmem>>, vector<32x128xf32>
    %cst_145 = arith.constant dense<0.000000e+00> : vector<8x128xf32>
    %342 = tpu.matmul %339, %341, %cst_145 {dimension_numbers = #tpu.dot_dimension_numbers<[1], [0], [0], [1], [0, 0, 1, 1], [], []>} : vector<8x32xf32>, vector<32x128xf32>, vector<8x128xf32> -> vector<8x128xf32>
    %343 = arith.addf %340, %342 : vector<8x128xf32>
    %cst_146 = arith.constant 5.000000e-01 : f32
    %344 = vector.broadcast %cst_146 : f32 to vector<8x128xf32>
    %345 = arith.mulf %344, %343 : vector<8x128xf32>
    %346 = arith.select %5, %343, %345 : vector<8x128xi1>, vector<8x128xf32>
    %347 = math.tanh %346 : vector<8x128xf32>
    %cst_147 = arith.constant 5.000000e-01 : f32
    %348 = vector.broadcast %cst_147 : f32 to vector<8x128xf32>
    %349 = arith.mulf %348, %347 : vector<8x128xf32>
    %cst_148 = arith.constant 5.000000e-01 : f32
    %350 = vector.broadcast %cst_148 : f32 to vector<8x128xf32>
    %351 = arith.addf %349, %350 : vector<8x128xf32>
    %352 = arith.select %5, %347, %351 : vector<8x128xi1>, vector<8x128xf32>
    %353 = vector.extract_strided_slice %352 {offsets = [0, 0], sizes = [8, 32], strides = [1, 1]} : vector<8x128xf32> to vector<8x32xf32>
    %354 = vector.extract_strided_slice %352 {offsets = [0, 32], sizes = [8, 32], strides = [1, 1]} : vector<8x128xf32> to vector<8x32xf32>
    %355 = vector.extract_strided_slice %352 {offsets = [0, 64], sizes = [8, 32], strides = [1, 1]} : vector<8x128xf32> to vector<8x32xf32>
    %356 = vector.extract_strided_slice %352 {offsets = [0, 96], sizes = [8, 32], strides = [1, 1]} : vector<8x128xf32> to vector<8x32xf32>
    %357 = arith.mulf %354, %337 : vector<8x32xf32>
    %358 = arith.mulf %353, %355 : vector<8x32xf32>
    %359 = arith.addf %357, %358 : vector<8x32xf32>
    %360 = math.tanh %359 : vector<8x32xf32>
    %361 = arith.mulf %356, %360 : vector<8x32xf32>
    %c56_149 = arith.constant 56 : index
    %c0_150 = arith.constant 0 : index
    %362 = vector.load %arg10[%c56_149, %c0_150] : memref<64x128xf32, #tpu.memory_space<vmem>>, vector<8x128xf32>
    %c0_151 = arith.constant 0 : index
    %c0_152 = arith.constant 0 : index
    %363 = vector.load %arg5[%c0_151, %c0_152] : memref<32x128xf32, #tpu.memory_space<vmem>>, vector<32x128xf32>
    %cst_153 = arith.constant dense<0.000000e+00> : vector<8x128xf32>
    %364 = tpu.matmul %361, %363, %cst_153 {dimension_numbers = #tpu.dot_dimension_numbers<[1], [0], [0], [1], [0, 0, 1, 1], [], []>} : vector<8x32xf32>, vector<32x128xf32>, vector<8x128xf32> -> vector<8x128xf32>
    %365 = arith.addf %362, %364 : vector<8x128xf32>
    %cst_154 = arith.constant 5.000000e-01 : f32
    %366 = vector.broadcast %cst_154 : f32 to vector<8x128xf32>
    %367 = arith.mulf %366, %365 : vector<8x128xf32>
    %368 = arith.select %5, %365, %367 : vector<8x128xi1>, vector<8x128xf32>
    %369 = math.tanh %368 : vector<8x128xf32>
    %cst_155 = arith.constant 5.000000e-01 : f32
    %370 = vector.broadcast %cst_155 : f32 to vector<8x128xf32>
    %371 = arith.mulf %370, %369 : vector<8x128xf32>
    %cst_156 = arith.constant 5.000000e-01 : f32
    %372 = vector.broadcast %cst_156 : f32 to vector<8x128xf32>
    %373 = arith.addf %371, %372 : vector<8x128xf32>
    %374 = arith.select %5, %369, %373 : vector<8x128xi1>, vector<8x128xf32>
    %375 = vector.extract_strided_slice %374 {offsets = [0, 0], sizes = [8, 32], strides = [1, 1]} : vector<8x128xf32> to vector<8x32xf32>
    %376 = vector.extract_strided_slice %374 {offsets = [0, 32], sizes = [8, 32], strides = [1, 1]} : vector<8x128xf32> to vector<8x32xf32>
    %377 = vector.extract_strided_slice %374 {offsets = [0, 64], sizes = [8, 32], strides = [1, 1]} : vector<8x128xf32> to vector<8x32xf32>
    %378 = vector.extract_strided_slice %374 {offsets = [0, 96], sizes = [8, 32], strides = [1, 1]} : vector<8x128xf32> to vector<8x32xf32>
    %379 = arith.mulf %376, %359 : vector<8x32xf32>
    %380 = arith.mulf %375, %377 : vector<8x32xf32>
    %381 = arith.addf %379, %380 : vector<8x32xf32>
    %382 = math.tanh %381 : vector<8x32xf32>
    %383 = arith.mulf %378, %382 : vector<8x32xf32>
    %c0_157 = arith.constant 0 : index
    %c0_158 = arith.constant 0 : index
    %384 = vector.load %arg7[%c0_157, %c0_158] : memref<32x128xf32, #tpu.memory_space<vmem>>, vector<32x128xf32>
    %cst_159 = arith.constant dense<0.000000e+00> : vector<8x128xf32>
    %385 = tpu.matmul %383, %384, %cst_159 {dimension_numbers = #tpu.dot_dimension_numbers<[1], [0], [0], [1], [0, 0, 1, 1], [], []>} : vector<8x32xf32>, vector<32x128xf32>, vector<8x128xf32> -> vector<8x128xf32>
    %c0_160 = arith.constant 0 : index
    %c0_161 = arith.constant 0 : index
    %386 = vector.load %arg8[%c0_160, %c0_161] : memref<1x128xf32, #tpu.memory_space<vmem>>, vector<1x128xf32>
    %387 = vector.broadcast %386 : vector<1x128xf32> to vector<8x128xf32>
    %388 = arith.addf %385, %387 : vector<8x128xf32>
    %c0_162 = arith.constant 0 : index
    %c0_163 = arith.constant 0 : index
    %389 = vector.load %arg9[%c0_162, %c0_163] : memref<8x128xf32, #tpu.memory_space<vmem>>, vector<8x128xf32>
    tpu.vector_store %arg9[%c0_162, %c0_163], %388 {strides = array<i32>} : memref<8x128xf32, #tpu.memory_space<vmem>>, vector<8x128xf32>,
    return
  }
}

</mosaic_0001>

<bundles_post_ra>
// kernel: tpu_custom_call.1
= control target key start
LH: loop header
LB: loop body
LE: loop exit
PB: predicated region body
PF: predicated region fallthrough
CT: control target
= control target key end

     0   :  { %14 = vsyncpa [#allocation5], 0  ;;  %s3473_s0 = inlined_call_operand.hbm [shape: f32[64,128], index: 0, kind: input, shape index: {}]   ;;  %s3474_s1 = inlined_call_operand.hbm [shape: f32[128,128], index: 1, kind: input, shape index: {}]   ;;  %s3475_s2 = inlined_call_operand.hbm [shape: f32[32,128], index: 2, kind: input, shape index: {}]   ;;  %s3476_s3 = inlined_call_operand.vmem [shape: f32[1,128], index: 3, kind: input, shape index: {}]   ;;  %s3477_s4 = inlined_call_operand.hbm [shape: f32[32,128], index: 4, kind: input, shape index: {}]   ;;  %s3478_s5 = inlined_call_operand.hbm [shape: f32[32,128], index: 5, kind: input, shape index: {}]   ;;  %s3479_s6 = inlined_call_operand.vmem [shape: f32[1,128], index: 6, kind: input, shape index: {}]   ;;  %s3480_s7 = inlined_call_operand.hbm [shape: f32[32,128], index: 7, kind: input, shape index: {}]   ;;  %s3481_s8 = inlined_call_operand.vmem [shape: f32[1,128], index: 8, kind: input, shape index: {}]   ;;  %s3482_s9 = inlined_call_operand.hbm [shape: f32[8,128], index: 9, kind: output, shape index: {}]  }
   0x1   :  { %15 = vsyncpa [#allocation8], 0 }
   0x2   :  { %16 = vsyncpa [#allocation11], 0 }
   0x3   :  { %17 = vsyncpa [#allocation14], 0 }
   0x4   :  { %18 = vsyncpa [#allocation6], 0  ;;  %s2956_s30 = smov [#allocation7]   ;;  %s2957_s11 = smov [#allocation10]  }
   0x5   :  { %s36_s10 = sshll.u32 %s2956_s30, 4  ;;  %s62_s12 = sshll.u32 %s2957_s11, 4  ;;  %s37_s10 = int_to_ptr.vmem [resolvable:$true] %s36_s10  ;;  %s3020_s12 = int_to_ptr.vmem [resolvable:$true] %s62_s12 }
   0x6   :  { %s2792_s15 = scalar_lea.hbm %s3474_s1, 2048 }
   0x7   :  { %p2793_p0 = scmp.ne.s32.totalorder %s3474_s1, %s2792_s15  ;;  %p2796_p1 = scmp.lt.u32.totalorder %s2792_s15, %s3474_s1 }
   0x9   :  { %p2798_p2 = pnand %p2796_p1, %p2793_p0 }
   0xb   :  { %2801 = shalt.err (!%p2798_p2)
}
   0xc   :  { %s2802_s20 = scalar_lea.vmem %s37_s10, 2048  ;;  %p2807_p4 = scmp.lt.s32.totalorder %s37_s10, %s37_s10 }
   0xd   :  { %p2803_p3 = scmp.ne.s32.totalorder %s37_s10, %s2802_s20  ;;  %p2808_p5 = scmp.lt.s32.totalorder %s2802_s20, %s2802_s20 }
   0xf   :  { %p2809_p6 = por %p2808_p5, %p2807_p4 }
  0x11   :  { %p2810_p7 = pnand %p2809_p6, %p2803_p3 }
  0x13   :  { %2813 = shalt.err (!%p2810_p7)
}
  0x14   :  { %s2958_s21 = smov 128   ;;  %s2959_s22 = smov 8  }
  0x15   :  { %42 = dma.hbm_to_vmem [thread:$0]  %s3474_s1, 2048, %s37_s10, [#allocation8], %s2958_s21, %s2958_s21, %s2959_s22  }
  0x16   :  { %s2814_s27 = scalar_lea.hbm %s3477_s4, 512 }
  0x17   :  { %p2815_p8 = scmp.ne.s32.totalorder %s3477_s4, %s2814_s27  ;;  %p2818_p9 = scmp.lt.u32.totalorder %s2814_s27, %s3477_s4 }
  0x19   :  { %p2820_p10 = pnand %p2818_p9, %p2815_p8 }
  0x1b   :  { %2823 = shalt.err (!%p2820_p10)
}
  0x1c   :  { %s2824_s13 = scalar_lea.vmem %s3020_s12, 512  ;;  %p2829_p12 = scmp.lt.s32.totalorder %s3020_s12, %s3020_s12 }
  0x1d   :  { %p2825_p11 = scmp.ne.s32.totalorder %s3020_s12, %s2824_s13  ;;  %p2830_p13 = scmp.lt.s32.totalorder %s2824_s13, %s2824_s13 }
  0x1f   :  { %p2831_p0 = por %p2830_p13, %p2829_p12 }
  0x21   :  { %p2832_p1 = pnand %p2831_p0, %p2825_p11 }
  0x23   :  { %2835 = shalt.err (!%p2832_p1)
}
  0x24   :  { %68 = dma.hbm_to_vmem [thread:$0]  %s3477_s4, 512, %s3020_s12, [#allocation11], %s2958_s21, %s2958_s21, %s2959_s22  }
  0x25   :  { %s2960_s14 = smov [#allocation4]   ;;  %s2961_s16 = smov [#allocation9]  }
  0x26   :  { %s24_s15 = sshll.u32 %s2960_s14, 4  ;;  %s48_s17 = sshll.u32 %s2961_s16, 4  ;;  %s25_s15 = int_to_ptr.vmem [resolvable:$true] %s24_s15  ;;  %s3057_s17 = int_to_ptr.vmem [resolvable:$true] %s48_s17 }
  0x27   :  { %s2836_s20 = scalar_lea.hbm %s3473_s0, 1024 }
  0x28   :  { %p2837_p2 = scmp.ne.s32.totalorder %s3473_s0, %s2836_s20  ;;  %p2840_p3 = scmp.lt.u32.totalorder %s2836_s20, %s3473_s0 }
  0x2a   :  { %p2842_p4 = pnand %p2840_p3, %p2837_p2 }
  0x2c   :  { %2845 = shalt.err (!%p2842_p4)
}
  0x2d   :  { %s2846_s4 = scalar_lea.vmem %s25_s15, 1024  ;;  %p2851_p6 = scmp.lt.s32.totalorder %s25_s15, %s25_s15 }
  0x2e   :  { %p2847_p5 = scmp.ne.s32.totalorder %s25_s15, %s2846_s4  ;;  %p2852_p7 = scmp.lt.s32.totalorder %s2846_s4, %s2846_s4 }
  0x30   :  { %p2853_p8 = por %p2852_p7, %p2851_p6 }
  0x32   :  { %p2854_p9 = pnand %p2853_p8, %p2847_p5 }
  0x34   :  { %2857 = shalt.err (!%p2854_p9)
}
  0x35   :  { %30 = dma.hbm_to_vmem [thread:$0]  %s3473_s0, 1024, %s25_s15, [#allocation5], %s2958_s21, %s2958_s21, %s2959_s22  }
  0x36   :  { %s2858_s30 = scalar_lea.hbm %s3475_s2, 512 }
  0x37   :  { %p2859_p10 = scmp.ne.s32.totalorder %s3475_s2, %s2858_s30  ;;  %p2862_p11 = scmp.lt.u32.totalorder %s2858_s30, %s3475_s2 }
  0x39   :  { %p2864_p12 = pnand %p2862_p11, %p2859_p10 }
  0x3b   :  { %2867 = shalt.err (!%p2864_p12)
}
  0x3c   :  { %s2868_s14 = scalar_lea.vmem %s3057_s17, 512  ;;  %p2873_p0 = scmp.lt.s32.totalorder %s3057_s17, %s3057_s17 }
  0x3d   :  { %p2869_p13 = scmp.ne.s32.totalorder %s3057_s17, %s2868_s14  ;;  %p2874_p1 = scmp.lt.s32.totalorder %s2868_s14, %s2868_s14 }
  0x3f   :  { %p2875_p2 = por %p2874_p1, %p2873_p0 }
  0x41   :  { %p2876_p3 = pnand %p2875_p2, %p2869_p13 }
  0x43   :  { %2879 = shalt.err (!%p2876_p3)
}
  0x44   :  { %54 = dma.hbm_to_vmem [thread:$0]  %s3475_s2, 512, %s3057_s17, [#allocation8], %s2958_s21, %s2958_s21, %s2959_s22  }
  0x45   :  { %s2962_s16 = smov [#allocation12]   ;;  %s2963_s19 = smov [#allocation13]  }
  0x46   :  { %s74_s18 = sshll.u32 %s2962_s16, 4  ;;  %s88_s20 = sshll.u32 %s2963_s19, 4  ;;  %s75_s18 = int_to_ptr.vmem [resolvable:$true] %s74_s18  ;;  %s3094_s20 = int_to_ptr.vmem [resolvable:$true] %s88_s20 }
  0x47   :  { %s2880_s25 = scalar_lea.hbm %s3478_s5, 512 }
  0x48   :  { %p2881_p4 = scmp.ne.s32.totalorder %s3478_s5, %s2880_s25  ;;  %p2884_p5 = scmp.lt.u32.totalorder %s2880_s25, %s3478_s5 }
  0x4a   :  { %p2886_p6 = pnand %p2884_p5, %p2881_p4 }
  0x4c   :  { %2889 = shalt.err (!%p2886_p6)
}
  0x4d   :  { %s2890_s2 = scalar_lea.vmem %s75_s18, 512  ;;  %p2895_p8 = scmp.lt.s32.totalorder %s75_s18, %s75_s18 }
  0x4e   :  { %p2891_p7 = scmp.ne.s32.totalorder %s75_s18, %s2890_s2  ;;  %p2896_p9 = scmp.lt.s32.totalorder %s2890_s2, %s2890_s2 }
  0x50   :  { %p2897_p10 = por %p2896_p9, %p2895_p8 }
  0x52   :  { %p2898_p11 = pnand %p2897_p10, %p2891_p7 }
  0x54   :  { %2901 = shalt.err (!%p2898_p11)
}
  0x55   :  { %80 = dma.hbm_to_vmem [thread:$0]  %s3478_s5, 512, %s75_s18, [#allocation11], %s2958_s21, %s2958_s21, %s2959_s22  }
  0x56   :  { %s2902_s11 = scalar_lea.hbm %s3480_s7, 512 }
  0x57   :  { %p2903_p12 = scmp.ne.s32.totalorder %s3480_s7, %s2902_s11  ;;  %p2906_p13 = scmp.lt.u32.totalorder %s2902_s11, %s3480_s7 }
  0x59   :  { %p2908_p0 = pnand %p2906_p13, %p2903_p12 }
  0x5b   :  { %2911 = shalt.err (!%p2908_p0)
}
  0x5c   :  { %s2912_s0 = scalar_lea.vmem %s3094_s20, 512  ;;  %p2917_p2 = scmp.lt.s32.totalorder %s3094_s20, %s3094_s20 }
  0x5d   :  { %p2913_p1 = scmp.ne.s32.totalorder %s3094_s20, %s2912_s0  ;;  %p2918_p3 = scmp.lt.s32.totalorder %s2912_s0, %s2912_s0 }
  0x5f   :  { %p2919_p4 = por %p2918_p3, %p2917_p2 }
  0x61   :  { %p2920_p5 = pnand %p2919_p4, %p2913_p1 }
  0x63   :  { %2923 = shalt.err (!%p2920_p5)
}
  0x64   :  { %94 = dma.hbm_to_vmem [thread:$0]  %s3480_s7, 512, %s3094_s20, [#allocation14], %s2958_s21, %s2958_s21, %s2959_s22  }
  0x65   :  { %2946 = dma.done.wait [#allocation5], 1024  }
  0x66   :  { %2947 = vsyncadd [#allocation5], 4294966272 }
  0x67   :  { %2948 = dma.done.wait [#allocation8], 2560  }
  0x68   :  { %2949 = vsyncadd [#allocation8], 4294964736 }
  0x69   :  { %2950 = dma.done.wait [#allocation11], 1024  }
  0x6a   :  { %2951 = vsyncadd [#allocation11], 4294966272 }
  0x6b   :  { %2952 = dma.done.wait [#allocation14], 512  }
  0x6c   :  { %2953 = vsyncadd [#allocation14], 4294966784  ;;  %v2964_v0 = vmov 0.0|0.0   ;;  %vm2965_vm0 = vmmov 0   ;;  %v2966_v1 = vmov 0.0   ;;  %v128_v2 = vld [vmem:[#allocation7] sm:$0xff]  ;;  %v115_v36 = vlaneseq }
  0x6d   :  { %2604 = vmatprep.subr.bf16.mxu1 %v2964_v0  ;;  %2373 = vmatprep.mubr.msk.f32.mxu1 %vm2965_vm0, %v2966_v1  ;;  %v129_v3 = vld [vmem:[#allocation7 + $0x8] sm:$0xff]  ;;  %v130_v4 = vld [vmem:[#allocation7 + $0x10] sm:$0xff]  ;;  %v131_v6 = vld [vmem:[#allocation7 + $0x18] sm:$0xff]  ;;  %s2968_s22 = smov 32   ;;  %vm269_vm4 = vcmask 261120   ;;  %s2969_s20 = smov [#allocation15]  }
  0x6e   :  { %v2572_v5 = vpack.c.bf16 %v129_v3, %v128_v2  ;;  %v2576_v7 = vpack.c.bf16 %v131_v6, %v130_v4  ;;  %v132_v8 = vld [vmem:[#allocation7 + $0x20] sm:$0xff]  ;;  %v133_v9 = vld [vmem:[#allocation7 + $0x28] sm:$0xff]  ;;  %v134_v12 = vld [vmem:[#allocation7 + $0x30] sm:$0xff]  ;;  %v116_v37 = vand.u32 127, %v115_v36  ;;  %s2162_s23 = sshll.u32 %s2969_s20, 4  ;;  %s2163_s23 = int_to_ptr.vmem [resolvable:$true] %s2162_s23 }
  0x6f   :  { %v265_v10 = vld [vmem:[#allocation9] sm:$0xff]  ;;  %v2580_v11 = vpack.c.bf16 %v133_v9, %v132_v8  ;;  %v135_v13 = vld [vmem:[#allocation7 + $0x38] sm:$0xff]  ;;  %v266_v14 = vld [vmem:[#allocation9 + $0x8] sm:$0xff]  ;;  %s2924_s24 = scalar_lea.vmem %s2163_s23, 128  ;;  %p2929_p7 = scmp.lt.s32.totalorder %s2163_s23, %s2163_s23 }
  0x70   :  { %2573 = vmatprep.subr.bf16.mxu0 %v2572_v5  ;;  %v3134_v15 = vpack.c.bf16 %v266_v14, %v265_v10  ;;  %v120_v16 = vld [vmem:[#allocation4] sm:$0xff]  ;;  %v267_v17 = vld [vmem:[#allocation9 + $0x10] sm:$0xff]  ;;  %v268_v18 = vld [vmem:[#allocation9 + $0x18] sm:$0xff]  ;;  %v2584_v20 = vpack.c.bf16 %v135_v13, %v134_v12  ;;  %vm117_vm1 = vcmp.ge.s32.totalorder %v116_v37, 64  ;;  %vm118_vm2 = vcmp.lt.s32.totalorder %v116_v37, 96  ;;  %p2925_p6 = scmp.ne.s32.totalorder %s2163_s23, %s2924_s24  ;;  %p2930_p8 = scmp.lt.s32.totalorder %s2924_s24, %s2924_s24 }
  0x71   :  { %2575 = vmatpush3.bf16.msra.mxu0 %v2572_v5  ;;  %2353 = vmatprep.mubr.f32.mxu0 %v120_v16  ;;  %v3137_v19 = vpack.c.bf16 %v268_v18, %v267_v17  ;;  %v136_v21 = vld [vmem:[#allocation7 + $0x40] sm:$0xff]  ;;  %v137_v22 = vld [vmem:[#allocation7 + $0x48] sm:$0xff]  ;;  %v138_v24 = vld [vmem:[#allocation7 + $0x50] sm:$0xff] }
  0x72   :  { %2577 = vmatprep.subr.bf16.mxu0 %v2576_v7  ;;  %2606 = vmatpush3.bf16.msra.mxu1 %v3134_v15  ;;  %v2588_v23 = vpack.c.bf16 %v137_v22, %v136_v21  ;;  %v139_v25 = vld [vmem:[#allocation7 + $0x58] sm:$0xff]  ;;  %v140_v27 = vld [vmem:[#allocation7 + $0x60] sm:$0xff]  ;;  %v141_v28 = vld [vmem:[#allocation7 + $0x68] sm:$0xff]  ;;  %p2931_p9 = por %p2930_p8, %p2929_p7 }
  0x73   :  { %2607 = vmatprep.subr.bf16.mxu1 %v2964_v0  ;;  %v2592_v26 = vpack.c.bf16 %v139_v25, %v138_v24  ;;  %v2596_v29 = vpack.c.bf16 %v141_v28, %v140_v27  ;;  %v142_v30 = vld [vmem:[#allocation7 + $0x70] sm:$0xff]  ;;  %v143_v31 = vld [vmem:[#allocation7 + $0x78] sm:$0xff]  ;;  %v121_v33 = vld [vmem:[#allocation4 + $0x8] sm:$0xff] }
  0x74   :  { %v2600_v32 = vpack.c.bf16 %v143_v31, %v142_v30  ;;  %v3157_v38 = vld [vmem:[%s3476_s3] ss:$0 sm:$0xff]  ;;  %vm3160_vm3 = vmand %vm117_vm1, %vm118_vm2  ;;  %s2967_s3 = smov 64   ;;  %v122_v12 = vld [vmem:[#allocation4 + $0x10] sm:$0xff]  ;;  %p2932_p10 = pnand %p2931_p9, %p2925_p6 }
  0x75   :  { %2579 = vmatpush3.bf16.msra.mxu0 %v2576_v7  ;;  %v123_v13 = vld [vmem:[#allocation4 + $0x18] sm:$0xff] }
  0x76   :  { %2581 = vmatprep.subr.bf16.mxu0 %v2580_v11  ;;  %2609 = vmatpush3.bf16.msra.mxu1 %v3137_v19 }
  0x77   :  { %2610 = vmatprep.subr.bf16.mxu1 %v2964_v0 }
  0x79   :  { %2583 = vmatpush3.bf16.msra.mxu0 %v2580_v11  ;;  %2374 = vmatmul.mubr.f32.vlgmr.msra.gmra.mrb[0].mxu1 %v2966_v1 }
  0x7a   :  { %2585 = vmatprep.subr.bf16.mxu0 %v2584_v20  ;;  %2612 = vmatpush3.bf16.msra.mxu1 %v3134_v15 }
  0x7b   :  { %2613 = vmatprep.subr.bf16.mxu1 %v2964_v0  ;;  %2384 = vmatprep.mubr.msk.f32.mxu1 %vm2965_vm0, %v2966_v1 }
  0x7d   :  { %2587 = vmatpush3.bf16.msra.mxu0 %v2584_v20 }
  0x7e   :  { %2589 = vmatprep.subr.bf16.mxu0 %v2588_v23  ;;  %2615 = vmatpush3.bf16.msra.mxu1 %v3137_v19 }
  0x7f   :  { %2616 = vmatprep.subr.bf16.mxu1 %v2964_v0 }
  0x81   :  { %2591 = vmatpush3.bf16.msra.mxu0 %v2588_v23 }
  0x82   :  { %2593 = vmatprep.subr.bf16.mxu0 %v2592_v26 }
  0x85   :  { %2595 = vmatpush3.bf16.msra.mxu0 %v2592_v26 }
  0x86   :  { %2597 = vmatprep.subr.bf16.mxu0 %v2596_v29 }
  0x89   :  { %2599 = vmatpush3.bf16.msra.mxu0 %v2596_v29 }
  0x8a   :  { %2601 = vmatprep.subr.bf16.mxu0 %v2600_v32 }
  0x8d   :  { %2603 = vmatpush3.bf16.msra.mxu0 %v2600_v32 }
  0x8e   :  { %2634 = vmatprep.subr.bf16.mxu0 %v2964_v0 }
  0x90   :  { %2354 = vmatmul.mubr.f32.vlgmr.msra.gmra.mrb[0].mxu0 %v121_v33 }
  0x91   :  { %2636 = vmatpush3.bf16.msra.mxu0 %v3134_v15  ;;  %2356 = vmatprep.mubr.f32.mxu0 %v122_v12 }
  0x92   :  { %2637 = vmatprep.subr.bf16.mxu0 %v2964_v0 }
  0x94   :  { %2357 = vmatmul.mubr.f32.gmra.mrb[2].mxu0 %v123_v13 }
  0x95   :  { %2639 = vmatpush3.bf16.msra.mxu0 %v3137_v19 }
  0x96   :  { %2646 = vmatprep.subr.bf16.mxu0 %v2964_v0 }
 0x14c   :  { %v339_v34 = vpop.f32.mrb[0].mxu1 }
 0x14d   :  { %v2375_v35 = vpop.f32.mrb[1].mxu1 }
 0x163   :  { %v2355_v39 = vpop.f32.mrb[0].mxu0 }
 0x164   :  { %v217_v40 = vpop.f32.mrb[1].mxu0  ;;  %v223_v59 = vadd.f32 %v2355_v39, %v3157_v38 }
 0x165   :  { %v218_v41 = vadd.f32 %v3157_v38, %v217_v40 }
 0x167   :  { %v343_v42 = vadd.f32 %v339_v34, %v218_v41  ;;  %v2358_v18 = vpop.f32.mrb[2].mxu0 }
 0x168   :  { %v227_v20 = vpop.f32.mrb[3].mxu0 }
 0x169   :  { %v344_v44 = vmul.f32 0.5, %v343_v42  ;;  %v228_v22 = vadd.f32 %v3157_v38, %v227_v20 }
 0x16b   :  { %v345_v45 = vsel %vm3160_vm3, %v343_v42, %v344_v44  ;;  %v233_v42 = vadd.f32 %v2358_v18, %v3157_v38 }
 0x16c   :  { %2728 = vtanh.f32 %v345_v45 }
 0x176   :  { %v2729_v46 = vpop.eup %2728 }
 0x177   :  { %v347_v47 = vmul.f32 0.5, %v2729_v46 }
 0x179   :  { %v348_v48 = vadd.f32 0.5, %v347_v47 }
 0x17b   :  { %v349_v49 = vsel %vm3160_vm3, %v2729_v46, %v348_v48 }
 0x17c   :  { %352 = vrot.lane.b32.xlu0 %v349_v49, %s2967_s3  ;;  %v350_v52 = vmul.f32 0.0, %v349_v49 }
 0x1ee   :  { %v353_v50 = vpop.permute.xlu0 %352 }
 0x1ef   :  { %v355_v51 = vmul.f32 %v353_v50, %v349_v49 }
 0x1f1   :  { %357 = vrot.lane.b32.xlu0 %v355_v51, %s2968_s22 }
 0x263   :  { %v358_v53 = vpop.permute.xlu0 %357 }
 0x264   :  { %v360_v54 = vadd.f32 %v358_v53, %v350_v52 }
 0x266   :  { %2730 = vtanh.f32 %v360_v54 }
 0x270   :  { %v2731_v55 = vpop.eup %2730 }
 0x271   :  { %363 = vrot.lane.b32.xlu1 %v2731_v55, %s2967_s3 }
 0x2e3   :  { %v364_v56 = vpop.permute.xlu1 %363 }
 0x2e4   :  { %v366_v57 = vmul.f32 %v364_v56, %v349_v49 }
 0x2e6   :  { %368 = vrot.lane.b32.xlu1 %v366_v57, %s2968_s22 }
 0x358   :  { %v369_v58 = vpop.permute.xlu1 %368 }
 0x359   :  { %371 = vst.msk [vmem:[#allocation3] sm:$0xff] %vm269_vm4, %v369_v58  ;;  %2385 = vmatmul.mubr.msk.f32.vlgmr.msra.gmra.mrb[2].mxu1 %vm269_vm4, %v369_v58  ;;  %v124_v58 = vld [vmem:[#allocation4 + $0x20] sm:$0xff] }
 0x35a   :  { %2618 = vmatpush3.bf16.msra.mxu1 %v3134_v15  ;;  %2395 = vmatprep.mubr.msk.f32.mxu1 %vm2965_vm0, %v2966_v1 }
 0x35b   :  { %2619 = vmatprep.subr.bf16.mxu1 %v2964_v0  ;;  %2359 = vmatprep.mubr.f32.mxu0 %v124_v58 }
 0x35e   :  { %2621 = vmatpush3.bf16.msra.mxu1 %v3137_v19 }
 0x35f   :  { %2622 = vmatprep.subr.bf16.mxu1 %v2964_v0 }
 0x42c   :  { %v445_v60 = vpop.f32.mrb[2].mxu1 }
 0x42d   :  { %v449_v61 = vadd.f32 %v445_v60, %v223_v59  ;;  %v2386_v62 = vpop.f32.mrb[3].mxu1  ;;  %v125_v59 = vld [vmem:[#allocation4 + $0x28] sm:$0xff] }
 0x42e   :  { %2360 = vmatmul.mubr.f32.gmra.mrb[4].mxu0 %v125_v59 }
 0x42f   :  { %v450_v63 = vmul.f32 0.5, %v449_v61 }
 0x431   :  { %v451_v2 = vsel %vm3160_vm3, %v449_v61, %v450_v63 }
 0x432   :  { %2732 = vtanh.f32 %v451_v2 }
 0x43c   :  { %v2733_v3 = vpop.eup %2732 }
 0x43d   :  { %v453_v4 = vmul.f32 0.5, %v2733_v3 }
 0x43f   :  { %v454_v5 = vadd.f32 0.5, %v453_v4 }
 0x441   :  { %v455_v6 = vsel %vm3160_vm3, %v2733_v3, %v454_v5 }
 0x442   :  { %458 = vrot.lane.b32.xlu0 %v455_v6, %s2967_s3  ;;  %v456_v9 = vmul.f32 %v455_v6, %v360_v54 }
 0x4b4   :  { %v459_v7 = vpop.permute.xlu0 %458 }
 0x4b5   :  { %v461_v8 = vmul.f32 %v459_v7, %v455_v6 }
 0x4b7   :  { %463 = vrot.lane.b32.xlu1 %v461_v8, %s2968_s22 }
 0x501   :  { %v2361_v63 = vpop.f32.mrb[4].mxu0 }
 0x502   :  { %v237_v2 = vpop.f32.mrb[5].mxu0 }
 0x503   :  { %v238_v4 = vadd.f32 %v3157_v38, %v237_v2 }
 0x529   :  { %v464_v10 = vpop.permute.xlu1 %463 }
 0x52a   :  { %v466_v11 = vadd.f32 %v464_v10, %v456_v9 }
 0x52c   :  { %2734 = vtanh.f32 %v466_v11 }
 0x536   :  { %v2735_v14 = vpop.eup %2734 }
 0x537   :  { %469 = vrot.lane.b32.xlu0 %v2735_v14, %s2967_s3 }
 0x5a9   :  { %v470_v16 = vpop.permute.xlu0 %469 }
 0x5aa   :  { %v472_v17 = vmul.f32 %v470_v16, %v455_v6 }
 0x5ac   :  { %474 = vrot.lane.b32.xlu1 %v472_v17, %s2968_s22 }
 0x61e   :  { %v475_v21 = vpop.permute.xlu1 %474 }
 0x61f   :  { %477 = vst.msk [vmem:[#allocation3 + $0x8] sm:$0xff] %vm269_vm4, %v475_v21  ;;  %2396 = vmatmul.mubr.msk.f32.vlgmr.msra.gmra.mrb[4].mxu1 %vm269_vm4, %v475_v21  ;;  %v126_v21 = vld [vmem:[#allocation4 + $0x30] sm:$0xff] }
 0x620   :  { %2624 = vmatpush3.bf16.msra.mxu1 %v3134_v15  ;;  %2406 = vmatprep.mubr.msk.f32.mxu1 %vm2965_vm0, %v2966_v1 }
 0x621   :  { %2625 = vmatprep.subr.bf16.mxu1 %v2964_v0  ;;  %2362 = vmatprep.mubr.f32.mxu0 %v126_v21 }
 0x624   :  { %2627 = vmatpush3.bf16.msra.mxu1 %v3137_v19 }
 0x625   :  { %2628 = vmatprep.subr.bf16.mxu1 %v2964_v0 }
 0x6f2   :  { %v551_v23 = vpop.f32.mrb[4].mxu1 }
 0x6f3   :  { %v555_v24 = vadd.f32 %v551_v23, %v228_v22  ;;  %v2397_v25 = vpop.f32.mrb[5].mxu1  ;;  %v127_v22 = vld [vmem:[#allocation4 + $0x38] sm:$0xff] }
 0x6f4   :  { %2363 = vmatmul.mubr.f32.gmra.mrb[6].mxu0 %v127_v22  ;;  %v1271_v22 = vld [vmem:[#allocation12] sm:$0xff] }
 0x6f5   :  { %v556_v26 = vmul.f32 0.5, %v555_v24  ;;  %2428 = vmatprep.mubr.msk.f32.mxu0 %vm2965_vm0, %v2966_v1 }
 0x6f7   :  { %v557_v27 = vsel %vm3160_vm3, %v555_v24, %v556_v26 }
 0x6f8   :  { %2736 = vtanh.f32 %v557_v27 }
 0x702   :  { %v2737_v28 = vpop.eup %2736 }
 0x703   :  { %v559_v29 = vmul.f32 0.5, %v2737_v28 }
 0x705   :  { %v560_v30 = vadd.f32 0.5, %v559_v29  ;;  %v243_v29 = vadd.f32 %v2361_v63, %v3157_v38 }
 0x707   :  { %v561_v31 = vsel %vm3160_vm3, %v2737_v28, %v560_v30 }
 0x708   :  { %564 = vrot.lane.b32.xlu0 %v561_v31, %s2967_s3  ;;  %v562_v34 = vmul.f32 %v561_v31, %v466_v11 }
 0x77a   :  { %v565_v32 = vpop.permute.xlu0 %564 }
 0x77b   :  { %v567_v33 = vmul.f32 %v565_v32, %v561_v31 }
 0x77d   :  { %569 = vrot.lane.b32.xlu1 %v567_v33, %s2968_s22 }
 0x7c7   :  { %v3241_v26 = vpop.f32.mrb[6].mxu0 }
 0x7c8   :  { %v247_v27 = vpop.f32.mrb[7].mxu0 }
 0x7ef   :  { %v570_v35 = vpop.permute.xlu1 %569 }
 0x7f0   :  { %v572_v36 = vadd.f32 %v570_v35, %v562_v34 }
 0x7f2   :  { %2738 = vtanh.f32 %v572_v36 }
 0x7fc   :  { %v2739_v37 = vpop.eup %2738 }
 0x7fd   :  { %575 = vrot.lane.b32.xlu0 %v2739_v37, %s2967_s3 }
 0x86f   :  { %v576_v39 = vpop.permute.xlu0 %575 }
 0x870   :  { %v578_v40 = vmul.f32 %v576_v39, %v561_v31 }
 0x872   :  { %580 = vrot.lane.b32.xlu1 %v578_v40, %s2968_s22 }
 0x8e4   :  { %v581_v41 = vpop.permute.xlu1 %580 }
 0x8e5   :  { %583 = vst.msk [vmem:[#allocation3 + $0x10] sm:$0xff] %vm269_vm4, %v581_v41  ;;  %2407 = vmatmul.mubr.msk.f32.vlgmr.msra.gmra.mrb[6].mxu1 %vm269_vm4, %v581_v41 }
 0x8e6   :  { %2630 = vmatpush3.bf16.msra.mxu1 %v3134_v15  ;;  %2417 = vmatprep.mubr.msk.f32.mxu1 %vm2965_vm0, %v2966_v1 }
 0x8e7   :  { %2631 = vmatprep.subr.bf16.mxu1 %v2964_v0 }
 0x8ea   :  { %2633 = vmatpush3.bf16.msra.mxu1 %v3137_v19 }
 0x8eb   :  { %2640 = vmatprep.subr.bf16.mxu1 %v2964_v0 }
 0x9b8   :  { %v657_v44 = vpop.f32.mrb[6].mxu1 }
 0x9b9   :  { %v661_v45 = vadd.f32 %v657_v44, %v233_v42  ;;  %v2408_v46 = vpop.f32.mrb[7].mxu1  ;;  %v1122_v44 = vld [vmem:[#allocation10] sm:$0xff] }
 0x9bb   :  { %v662_v47 = vmul.f32 0.5, %v661_v45 }
 0x9bd   :  { %v663_v48 = vsel %vm3160_vm3, %v661_v45, %v662_v47  ;;  %v1123_v45 = vld [vmem:[#allocation10 + $0x8] sm:$0xff] }
 0x9be   :  { %2740 = vtanh.f32 %v663_v48  ;;  %v2652_v46 = vpack.c.bf16 %v1123_v45, %v1122_v44 }
 0x9c8   :  { %v2741_v49 = vpop.eup %2740 }
 0x9c9   :  { %v665_v50 = vmul.f32 0.5, %v2741_v49 }
 0x9cb   :  { %v666_v51 = vadd.f32 0.5, %v665_v50  ;;  %v1124_v50 = vld [vmem:[#allocation10 + $0x10] sm:$0xff] }
 0x9cd   :  { %v667_v52 = vsel %vm3160_vm3, %v2741_v49, %v666_v51  ;;  %v1125_v51 = vld [vmem:[#allocation10 + $0x18] sm:$0xff] }
 0x9ce   :  { %670 = vrot.lane.b32.xlu0 %v667_v52, %s2967_s3  ;;  %v668_v55 = vmul.f32 %v667_v52, %v572_v36 }
 0xa40   :  { %v671_v53 = vpop.permute.xlu0 %670 }
 0xa41   :  { %v673_v54 = vmul.f32 %v671_v53, %v667_v52 }
 0xa43   :  { %675 = vrot.lane.b32.xlu1 %v673_v54, %s2968_s22  ;;  %v1114_v54 = vld [vmem:[#allocation3] sm:$0xff] }
 0xab5   :  { %v676_v56 = vpop.permute.xlu1 %675 }
 0xab6   :  { %v678_v57 = vadd.f32 %v676_v56, %v668_v55  ;;  %v1115_v55 = vld [vmem:[#allocation3 + $0x8] sm:$0xff]  ;;  %v1116_v56 = vld [vmem:[#allocation3 + $0x10] sm:$0xff] }
 0xab8   :  { %2742 = vtanh.f32 %v678_v57 }
 0xac2   :  { %v2743_v60 = vpop.eup %2742 }
 0xac3   :  { %681 = vrot.lane.b32.xlu0 %v2743_v60, %s2967_s3  ;;  %v248_v60 = vadd.f32 %v3157_v38, %v247_v27  ;;  %v1274_v27 = vld [vmem:[#allocation12 + $0x18] sm:$0xff] }
 0xb35   :  { %v682_v61 = vpop.permute.xlu0 %681 }
 0xb36   :  { %v684_v62 = vmul.f32 %v682_v61, %v667_v52  ;;  %v2656_v52 = vpack.c.bf16 %v1125_v51, %v1124_v50 }
 0xb38   :  { %686 = vrot.lane.b32.xlu1 %v684_v62, %s2968_s22 }
 0xbaa   :  { %v687_v3 = vpop.permute.xlu1 %686 }
 0xbab   :  { %689 = vst.msk [vmem:[#allocation3 + $0x18] sm:$0xff] %vm269_vm4, %v687_v3  ;;  %2418 = vmatmul.mubr.msk.f32.vlgmr.msra.gmra.mrb[8].mxu1 %vm269_vm4, %v687_v3 }
 0xbac   :  { %2642 = vmatpush3.bf16.msra.mxu1 %v3134_v15  ;;  %2439 = vmatprep.mubr.msk.f32.mxu1 %vm2965_vm0, %v2966_v1 }
 0xbad   :  { %2643 = vmatprep.subr.bf16.mxu1 %v2964_v0 }
 0xbb0   :  { %2645 = vmatpush3.bf16.msra.mxu1 %v3137_v19 }
 0xbb1   :  { %2653 = vmatprep.subr.bf16.mxu1 %v2652_v46 }
 0xc7e   :  { %v763_v5 = vpop.f32.mrb[8].mxu1 }
 0xc7f   :  { %v767_v6 = vadd.f32 %v763_v5, %v238_v4  ;;  %v2419_v7 = vpop.f32.mrb[9].mxu1 }
 0xc81   :  { %v768_v8 = vmul.f32 0.5, %v767_v6 }
 0xc83   :  { %v769_v9 = vsel %vm3160_vm3, %v767_v6, %v768_v8 }
 0xc84   :  { %2744 = vtanh.f32 %v769_v9 }
 0xc8e   :  { %v2745_v10 = vpop.eup %2744 }
 0xc8f   :  { %v771_v11 = vmul.f32 0.5, %v2745_v10 }
 0xc91   :  { %v772_v12 = vadd.f32 0.5, %v771_v11 }
 0xc93   :  { %v773_v13 = vsel %vm3160_vm3, %v2745_v10, %v772_v12 }
 0xc94   :  { %776 = vrot.lane.b32.xlu0 %v773_v13, %s2967_s3  ;;  %v774_v17 = vmul.f32 %v773_v13, %v678_v57  ;;  %v1117_v57 = vld [vmem:[#allocation3 + $0x18] sm:$0xff] }
 0xd06   :  { %v777_v14 = vpop.permute.xlu0 %776 }
 0xd07   :  { %v779_v16 = vmul.f32 %v777_v14, %v773_v13 }
 0xd09   :  { %781 = vrot.lane.b32.xlu1 %v779_v16, %s2968_s22 }
 0xd7b   :  { %v782_v18 = vpop.permute.xlu1 %781 }
 0xd7c   :  { %v784_v20 = vadd.f32 %v782_v18, %v774_v17 }
 0xd7e   :  { %2746 = vtanh.f32 %v784_v20 }
 0xd88   :  { %v2747_v23 = vpop.eup %2746 }
 0xd89   :  { %787 = vrot.lane.b32.xlu0 %v2747_v23, %s2967_s3  ;;  %v1272_v23 = vld [vmem:[#allocation12 + $0x8] sm:$0xff] }
 0xdfb   :  { %v788_v24 = vpop.permute.xlu0 %787 }
 0xdfc   :  { %v790_v25 = vmul.f32 %v788_v24, %v773_v13  ;;  %v3290_v24 = vpack.c.bf16 %v1272_v23, %v1271_v22 }
 0xdfe   :  { %792 = vrot.lane.b32.xlu1 %v790_v25, %s2968_s22  ;;  %v1273_v25 = vld [vmem:[#allocation12 + $0x10] sm:$0xff] }
 0xe70   :  { %v793_v28 = vpop.permute.xlu1 %792 }
 0xe71   :  { %795 = vst.msk [vmem:[#allocation3 + $0x20] sm:$0xff] %vm269_vm4, %v793_v28  ;;  %2429 = vmatmul.mubr.msk.f32.vlgmr.msra.gmra.mrb[8].mxu0 %vm269_vm4, %v793_v28  ;;  %v3294_v28 = vpack.c.bf16 %v1274_v27, %v1273_v25 }
 0xe72   :  { %2648 = vmatpush3.bf16.msra.mxu0 %v3134_v15  ;;  %2450 = vmatprep.mubr.msk.f32.mxu0 %vm2965_vm0, %v2966_v1 }
 0xe73   :  { %2649 = vmatprep.subr.bf16.mxu0 %v2964_v0 }
 0xe76   :  { %2651 = vmatpush3.bf16.msra.mxu0 %v3137_v19 }
 0xe77   :  { %2660 = vmatprep.subr.bf16.mxu0 %v2964_v0 }
 0xe78   :  { %v1118_v58 = vld [vmem:[#allocation3 + $0x20] sm:$0xff] }
 0xf44   :  { %v869_v30 = vpop.f32.mrb[8].mxu0 }
 0xf45   :  { %v873_v31 = vadd.f32 %v869_v30, %v243_v29  ;;  %v2430_v32 = vpop.f32.mrb[9].mxu0 }
 0xf47   :  { %v874_v33 = vmul.f32 0.5, %v873_v31 }
 0xf49   :  { %v875_v34 = vsel %vm3160_vm3, %v873_v31, %v874_v33  ;;  %v253_v33 = vadd.f32 %v3241_v26, %v3157_v38 }
 0xf4a   :  { %2748 = vtanh.f32 %v875_v34 }
 0xf54   :  { %v2749_v15 = vpop.eup %2748 }
 0xf55   :  { %v877_v35 = vmul.f32 0.5, %v2749_v15 }
 0xf57   :  { %v878_v36 = vadd.f32 0.5, %v877_v35 }
 0xf59   :  { %v879_v37 = vsel %vm3160_vm3, %v2749_v15, %v878_v36  ;;  %v3320_v36 = vld [vmem:[%s3479_s6] ss:$0 sm:$0xff] }
 0xf5a   :  { %882 = vrot.lane.b32.xlu0 %v879_v37, %s2967_s3  ;;  %v880_v40 = vmul.f32 %v879_v37, %v784_v20 }
 0xfcc   :  { %v883_v19 = vpop.permute.xlu0 %882 }
 0xfcd   :  { %v885_v39 = vmul.f32 %v883_v19, %v879_v37 }
 0xfcf   :  { %887 = vrot.lane.b32.xlu1 %v885_v39, %s2968_s22 }
0x1041   :  { %v888_v41 = vpop.permute.xlu1 %887 }
0x1042   :  { %v890_v42 = vadd.f32 %v888_v41, %v880_v40 }
0x1044   :  { %2750 = vtanh.f32 %v890_v42 }
0x104e   :  { %v2751_v47 = vpop.eup %2750 }
0x104f   :  { %893 = vrot.lane.b32.xlu0 %v2751_v47, %s2967_s3 }
0x10c1   :  { %v894_v48 = vpop.permute.xlu0 %893 }
0x10c2   :  { %v896_v49 = vmul.f32 %v894_v48, %v879_v37 }
0x10c4   :  { %898 = vrot.lane.b32.xlu1 %v896_v49, %s2968_s22 }
0x1136   :  { %v899_v53 = vpop.permute.xlu1 %898 }
0x1137   :  { %901 = vst.msk [vmem:[#allocation3 + $0x28] sm:$0xff] %vm269_vm4, %v899_v53  ;;  %2440 = vmatmul.mubr.msk.f32.vlgmr.msra.gmra.mrb[10].mxu1 %vm269_vm4, %v899_v53 }
0x1138   :  { %2655 = vmatpush3.bf16.msra.mxu1 %v2652_v46  ;;  %2461 = vmatprep.mubr.msk.f32.mxu1 %vm269_vm4, %v1114_v54 }
0x1139   :  { %2657 = vmatprep.subr.bf16.mxu1 %v2656_v52 }
0x113c   :  { %2659 = vmatpush3.bf16.msra.mxu1 %v2656_v52 }
0x113d   :  { %2672 = vmatprep.subr.bf16.mxu1 %v2964_v0 }
0x113e   :  { %v1119_v59 = vld [vmem:[#allocation3 + $0x28] sm:$0xff] }
0x113f   :  { %2462 = vmatmul.mubr.msk.f32.vlgmr.msra.gmra.mrb[12].mxu1 %vm269_vm4, %v1115_v55 }
0x1140   :  { %2464 = vmatprep.mubr.msk.f32.mxu1 %vm269_vm4, %v1116_v56  ;;  %2674 = vmatpush3.bf16.msra.mxu1 %v3290_v24 }
0x1141   :  { %2675 = vmatprep.subr.bf16.mxu1 %v2964_v0 }
0x1143   :  { %2465 = vmatmul.mubr.msk.f32.gmra.mrb[14].mxu1 %vm269_vm4, %v1117_v57 }
0x1144   :  { %2467 = vmatprep.mubr.msk.f32.mxu1 %vm269_vm4, %v1118_v58  ;;  %2677 = vmatpush3.bf16.msra.mxu1 %v3294_v28 }
0x1145   :  { %2684 = vmatprep.subr.bf16.mxu1 %v2964_v0 }
0x1147   :  { %2468 = vmatmul.mubr.msk.f32.gmra.mrb[16].mxu1 %vm269_vm4, %v1119_v59 }
0x120a   :  { %v975_v61 = vpop.f32.mrb[10].mxu1 }
0x120b   :  { %v979_v62 = vadd.f32 %v975_v61, %v248_v60  ;;  %v2441_v63 = vpop.f32.mrb[11].mxu1 }
0x120d   :  { %v980_v2 = vmul.f32 0.5, %v979_v62 }
0x120f   :  { %v981_v3 = vsel %vm3160_vm3, %v979_v62, %v980_v2 }
0x1210   :  { %2752 = vtanh.f32 %v981_v3 }
0x1212   :  { %v3272_v4 = vpop.f32.mrb[12].mxu1 }
0x1213   :  { %v1223_v5 = vpop.f32.mrb[13].mxu1 }
0x1214   :  { %v1224_v37 = vadd.f32 %v3320_v36, %v1223_v5 }
0x1216   :  { %v3274_v6 = vpop.f32.mrb[14].mxu1 }
0x1217   :  { %v3276_v7 = vpop.f32.mrb[15].mxu1 }
0x121a   :  { %v2753_v8 = vpop.eup %2752  ;;  %v3278_v9 = vpop.f32.mrb[16].mxu1 }
0x121b   :  { %v3280_v10 = vpop.f32.mrb[17].mxu1  ;;  %v983_v11 = vmul.f32 0.5, %v2753_v8 }
0x121d   :  { %v984_v12 = vadd.f32 0.5, %v983_v11 }
0x121f   :  { %v985_v13 = vsel %vm3160_vm3, %v2753_v8, %v984_v12  ;;  %v1229_v12 = vadd.f32 %v3272_v4, %v3320_v36 }
0x1220   :  { %988 = vrot.lane.b32.xlu0 %v985_v13, %s2967_s3  ;;  %v986_v17 = vmul.f32 %v985_v13, %v890_v42 }
0x1292   :  { %v989_v14 = vpop.permute.xlu0 %988 }
0x1293   :  { %v991_v16 = vmul.f32 %v989_v14, %v985_v13 }
0x1295   :  { %993 = vrot.lane.b32.xlu1 %v991_v16, %s2968_s22 }
0x1307   :  { %v994_v18 = vpop.permute.xlu1 %993 }
0x1308   :  { %v3286_v20 = vadd.f32 %v994_v18, %v986_v17 }
0x130a   :  { %2754 = vtanh.f32 %v3286_v20 }
0x1314   :  { %v2755_v21 = vpop.eup %2754 }
0x1315   :  { %999 = vrot.lane.b32.xlu0 %v2755_v21, %s2967_s3 }
0x1387   :  { %v1000_v29 = vpop.permute.xlu0 %999 }
0x1388   :  { %v1002_v30 = vmul.f32 %v1000_v29, %v985_v13 }
0x138a   :  { %1004 = vrot.lane.b32.xlu1 %v1002_v30, %s2968_s22 }
0x13fc   :  { %v1005_v31 = vpop.permute.xlu1 %1004 }
0x13fd   :  { %1007 = vst.msk [vmem:[#allocation3 + $0x30] sm:$0xff] %vm269_vm4, %v1005_v31  ;;  %2451 = vmatmul.mubr.msk.f32.vlgmr.msra.gmra.mrb[10].mxu0 %vm269_vm4, %v1005_v31 }
0x13fe   :  { %2662 = vmatpush3.bf16.msra.mxu0 %v3290_v24  ;;  %2481 = vmatprep.mubr.msk.f32.mxu0 %vm2965_vm0, %v2966_v1 }
0x13ff   :  { %2663 = vmatprep.subr.bf16.mxu0 %v2964_v0 }
0x1402   :  { %2665 = vmatpush3.bf16.msra.mxu0 %v3294_v28 }
0x1403   :  { %2666 = vmatprep.subr.bf16.mxu0 %v2964_v0 }
0x1404   :  { %v1120_v32 = vld [vmem:[#allocation3 + $0x30] sm:$0xff] }
0x1405   :  { %2482 = vmatmul.mubr.f32.vlgmr.msra.gmra.mrb[12].mxu0 %v2966_v1  ;;  %2470 = vmatprep.mubr.msk.f32.mxu1 %vm269_vm4, %v1120_v32 }
0x1406   :  { %2668 = vmatpush3.bf16.msra.mxu0 %v3290_v24  ;;  %2492 = vmatprep.mubr.msk.f32.mxu0 %vm2965_vm0, %v2966_v1 }
0x1407   :  { %2669 = vmatprep.subr.bf16.mxu0 %v2964_v0 }
0x140a   :  { %2671 = vmatpush3.bf16.msra.mxu0 %v3294_v28 }
0x140b   :  { %2678 = vmatprep.subr.bf16.mxu0 %v2964_v0 }
0x14d0   :  { %v1081_v34 = vpop.f32.mrb[10].mxu0 }
0x14d1   :  { %v1085_v15 = vadd.f32 %v1081_v34, %v253_v33  ;;  %v2452_v35 = vpop.f32.mrb[11].mxu0 }
0x14d3   :  { %v1086_v48 = vmul.f32 0.5, %v1085_v15 }
0x14d5   :  { %v1087_v49 = vsel %vm3160_vm3, %v1085_v15, %v1086_v48 }
0x14d8   :  { %v1341_v19 = vpop.f32.mrb[12].mxu0 }
0x14d9   :  { %v1345_v39 = vadd.f32 %v1341_v19, %v1224_v37  ;;  %v2483_v40 = vpop.f32.mrb[13].mxu0 }
0x14db   :  { %v1346_v41 = vmul.f32 0.5, %v1345_v39 }
0x14dd   :  { %v1347_v42 = vsel %vm3160_vm3, %v1345_v39, %v1346_v41  ;;  %v1234_v39 = vadd.f32 %v3320_v36, %v3276_v7 }
0x14de   :  { %2756 = vtanh.f32 %v1347_v42 }
0x14df   :  { %2758 = vtanh.f32 %v1087_v49 }
0x14e8   :  { %v2757_v44 = vpop.eup %2756 }
0x14e9   :  { %v1349_v38 = vmul.f32 0.5, %v2757_v44  ;;  %v2759_v53 = vpop.eup %2758 }
0x14ea   :  { %v1089_v54 = vmul.f32 0.5, %v2759_v53 }
0x14eb   :  { %v1350_v26 = vadd.f32 0.5, %v1349_v38 }
0x14ec   :  { %v1090_v56 = vadd.f32 0.5, %v1089_v54 }
0x14ed   :  { %v1351_v45 = vsel %vm3160_vm3, %v2757_v44, %v1350_v26 }
0x14ee   :  { %1354 = vrot.lane.b32.xlu0 %v1351_v45, %s2967_s3  ;;  %v1352_v50 = vmul.f32 0.0, %v1351_v45  ;;  %v1091_v57 = vsel %vm3160_vm3, %v2759_v53, %v1090_v56  ;;  %v1239_v56 = vadd.f32 %v3274_v6, %v3320_v36 }
0x14ef   :  { %v1092_v63 = vmul.f32 %v1091_v57, %v3286_v20 }
0x1560   :  { %v1355_v46 = vpop.permute.xlu0 %1354 }
0x1561   :  { %v1357_v47 = vmul.f32 %v1355_v46, %v1351_v45 }
0x1563   :  { %1359 = vrot.lane.b32.xlu1 %v1357_v47, %s2968_s22 }
0x15d5   :  { %v1360_v51 = vpop.permute.xlu1 %1359 }
0x15d6   :  { %v1362_v52 = vadd.f32 %v1360_v51, %v1352_v50 }
0x15d8   :  { %2760 = vtanh.f32 %v1362_v52 }
0x15e2   :  { %v2761_v55 = vpop.eup %2760 }
0x15e3   :  { %1365 = vrot.lane.b32.xlu0 %v2761_v55, %s2967_s3 }
0x15e7   :  { %1094 = vrot.lane.b32.xlu0 %v1091_v57, %s2967_s3 }
0x1655   :  { %v1366_v58 = vpop.permute.xlu0 %1365 }
0x1656   :  { %v1368_v59 = vmul.f32 %v1366_v58, %v1351_v45 }
0x1658   :  { %1371 = vrot.lane.b32.xlu1 %v1368_v59, %s2968_s22 }
0x1659   :  { %v1095_v60 = vpop.permute.xlu0 %1094 }
0x165a   :  { %v1097_v61 = vmul.f32 %v1095_v60, %v1091_v57 }
0x165c   :  { %1099 = vrot.lane.b32.xlu0 %v1097_v61, %s2968_s22 }
0x16ca   :  { %v1372_v62 = vpop.permute.xlu1 %1371 }
0x16cb   :  { %2493 = vmatmul.mubr.msk.f32.vlgmr.msra.gmra.mrb[14].mxu0 %vm269_vm4, %v1372_v62 }
0x16cc   :  { %2680 = vmatpush3.bf16.msra.mxu0 %v3290_v24  ;;  %2514 = vmatprep.mubr.msk.f32.mxu0 %vm2965_vm0, %v2966_v1 }
0x16cd   :  { %2681 = vmatprep.subr.bf16.mxu0 %v2964_v0 }
0x16ce   :  { %v1100_v2 = vpop.permute.xlu0 %1099 }
0x16cf   :  { %v1102_v3 = vadd.f32 %v1100_v2, %v1092_v63 }
0x16d0   :  { %2683 = vmatpush3.bf16.msra.mxu0 %v3294_v28 }
0x16d1   :  { %2762 = vtanh.f32 %v1102_v3  ;;  %2690 = vmatprep.subr.bf16.mxu0 %v2964_v0 }
0x16db   :  { %v2763_v5 = vpop.eup %2762 }
0x16dc   :  { %1105 = vrot.lane.b32.xlu0 %v2763_v5, %s2967_s3 }
0x174e   :  { %v1106_v8 = vpop.permute.xlu0 %1105 }
0x174f   :  { %v1108_v11 = vmul.f32 %v1106_v8, %v1091_v57 }
0x1751   :  { %1110 = vrot.lane.b32.xlu0 %v1108_v11, %s2968_s22 }
0x179e   :  { %v1441_v13 = vpop.f32.mrb[14].mxu0 }
0x179f   :  { %v1445_v14 = vadd.f32 %v1441_v13, %v1229_v12  ;;  %v2494_v16 = vpop.f32.mrb[15].mxu0 }
0x17a1   :  { %v1446_v17 = vmul.f32 0.5, %v1445_v14 }
0x17a3   :  { %v1447_v18 = vsel %vm3160_vm3, %v1445_v14, %v1446_v17 }
0x17a4   :  { %2764 = vtanh.f32 %v1447_v18  ;;  %v1244_v18 = vadd.f32 %v3320_v36, %v3280_v10 }
0x17ae   :  { %v2765_v20 = vpop.eup %2764 }
0x17af   :  { %v1449_v21 = vmul.f32 0.5, %v2765_v20 }
0x17b1   :  { %v1450_v22 = vadd.f32 0.5, %v1449_v21 }
0x17b3   :  { %v1451_v23 = vsel %vm3160_vm3, %v2765_v20, %v1450_v22 }
0x17b4   :  { %1454 = vrot.lane.b32.xlu1 %v1451_v23, %s2967_s3  ;;  %v1452_v30 = vmul.f32 %v1451_v23, %v1362_v52 }
0x17c3   :  { %v1111_v25 = vpop.permute.xlu0 %1110 }
0x17c4   :  { %1113 = vst.msk [vmem:[#allocation3 + $0x38] sm:$0xff] %vm269_vm4, %v1111_v25 }
0x17cb   :  { %v1121_v4 = vld [vmem:[#allocation3 + $0x38] sm:$0xff] }
0x17cc   :  { %2471 = vmatmul.mubr.msk.f32.gmra.mrb[18].mxu1 %vm269_vm4, %v1121_v4 }
0x17cd   :  { %2503 = vmatprep.mubr.msk.f32.mxu1 %vm2965_vm0, %v2966_v1 }
0x1826   :  { %v1455_v27 = vpop.permute.xlu1 %1454 }
0x1827   :  { %v1457_v29 = vmul.f32 %v1455_v27, %v1451_v23 }
0x1829   :  { %1459 = vrot.lane.b32.xlu1 %v1457_v29, %s2968_s22 }
0x189b   :  { %v1460_v31 = vpop.permute.xlu1 %1459 }
0x189c   :  { %v1462_v32 = vadd.f32 %v1460_v31, %v1452_v30 }
0x189e   :  { %2766 = vtanh.f32 %v1462_v32 }
0x189f   :  { %v3359_v33 = vpop.f32.mrb[18].mxu1 }
0x18a0   :  { %v3361_v34 = vpop.f32.mrb[19].mxu1 }
0x18a8   :  { %v2767_v15 = vpop.eup %2766 }
0x18a9   :  { %1465 = vrot.lane.b32.xlu1 %v2767_v15, %s2967_s3 }
0x191b   :  { %v1466_v35 = vpop.permute.xlu1 %1465 }
0x191c   :  { %v1468_v37 = vmul.f32 %v1466_v35, %v1451_v23 }
0x191e   :  { %1471 = vrot.lane.b32.xlu1 %v1468_v37, %s2968_s22 }
0x1990   :  { %v1472_v19 = vpop.permute.xlu1 %1471 }
0x1991   :  { %2504 = vmatmul.mubr.msk.f32.vlgmr.msra.gmra.mrb[20].mxu1 %vm269_vm4, %v1472_v19 }
0x1992   :  { %2686 = vmatpush3.bf16.msra.mxu1 %v3290_v24  ;;  %2525 = vmatprep.mubr.msk.f32.mxu1 %vm2965_vm0, %v2966_v1 }
0x1993   :  { %2687 = vmatprep.subr.bf16.mxu1 %v2964_v0 }
0x1996   :  { %2689 = vmatpush3.bf16.msra.mxu1 %v3294_v28 }
0x1997   :  { %2696 = vmatprep.subr.bf16.mxu1 %v2964_v0 }
0x1a64   :  { %v1541_v40 = vpop.f32.mrb[20].mxu1 }
0x1a65   :  { %v1545_v41 = vadd.f32 %v1541_v40, %v1234_v39  ;;  %v2505_v42 = vpop.f32.mrb[21].mxu1 }
0x1a67   :  { %v1546_v44 = vmul.f32 0.5, %v1545_v41 }
0x1a69   :  { %v1547_v38 = vsel %vm3160_vm3, %v1545_v41, %v1546_v44  ;;  %v1249_v41 = vadd.f32 %v3278_v9, %v3320_v36 }
0x1a6a   :  { %2768 = vtanh.f32 %v1547_v38 }
0x1a74   :  { %v2769_v26 = vpop.eup %2768 }
0x1a75   :  { %v1549_v45 = vmul.f32 0.5, %v2769_v26 }
0x1a77   :  { %v1550_v46 = vadd.f32 0.5, %v1549_v45 }
0x1a79   :  { %v1551_v47 = vsel %vm3160_vm3, %v2769_v26, %v1550_v46 }
0x1a7a   :  { %1554 = vrot.lane.b32.xlu0 %v1551_v47, %s2967_s3  ;;  %v1552_v7 = vmul.f32 %v1551_v47, %v1462_v32 }
0x1aec   :  { %v1555_v48 = vpop.permute.xlu0 %1554 }
0x1aed   :  { %v1557_v49 = vmul.f32 %v1555_v48, %v1551_v47 }
0x1aef   :  { %1559 = vrot.lane.b32.xlu1 %v1557_v49, %s2968_s22 }
0x1b61   :  { %v1560_v50 = vpop.permute.xlu1 %1559 }
0x1b62   :  { %v1562_v51 = vadd.f32 %v1560_v50, %v1552_v7 }
0x1b64   :  { %2770 = vtanh.f32 %v1562_v51 }
0x1b6e   :  { %v2771_v52 = vpop.eup %2770 }
0x1b6f   :  { %1565 = vrot.lane.b32.xlu0 %v2771_v52, %s2967_s3 }
0x1be1   :  { %v1566_v53 = vpop.permute.xlu0 %1565 }
0x1be2   :  { %v1568_v54 = vmul.f32 %v1566_v53, %v1551_v47 }
0x1be4   :  { %1571 = vrot.lane.b32.xlu1 %v1568_v54, %s2968_s22 }
0x1c56   :  { %v1572_v55 = vpop.permute.xlu1 %1571 }
0x1c57   :  { %2515 = vmatmul.mubr.msk.f32.vlgmr.msra.gmra.mrb[16].mxu0 %vm269_vm4, %v1572_v55  ;;  %v1254_v55 = vadd.f32 %v3320_v36, %v3361_v34 }
0x1c58   :  { %2692 = vmatpush3.bf16.msra.mxu0 %v3290_v24  ;;  %2536 = vmatprep.mubr.msk.f32.mxu0 %vm2965_vm0, %v2966_v1 }
0x1c59   :  { %2693 = vmatprep.subr.bf16.mxu0 %v2964_v0 }
0x1c5c   :  { %2695 = vmatpush3.bf16.msra.mxu0 %v3294_v28 }
0x1c5d   :  { %2702 = vmatprep.subr.bf16.mxu0 %v2964_v0 }
0x1d2a   :  { %v1641_v57 = vpop.f32.mrb[16].mxu0 }
0x1d2b   :  { %v1645_v58 = vadd.f32 %v1641_v57, %v1239_v56  ;;  %v2516_v59 = vpop.f32.mrb[17].mxu0 }
0x1d2d   :  { %v1646_v60 = vmul.f32 0.5, %v1645_v58 }
0x1d2f   :  { %v1647_v61 = vsel %vm3160_vm3, %v1645_v58, %v1646_v60 }
0x1d30   :  { %2772 = vtanh.f32 %v1647_v61 }
0x1d3a   :  { %v2773_v62 = vpop.eup %2772 }
0x1d3b   :  { %v1649_v63 = vmul.f32 0.5, %v2773_v62 }
0x1d3d   :  { %v1650_v2 = vadd.f32 0.5, %v1649_v63 }
0x1d3f   :  { %v1651_v3 = vsel %vm3160_vm3, %v2773_v62, %v1650_v2 }
0x1d40   :  { %1654 = vrot.lane.b32.xlu0 %v1651_v3, %s2967_s3  ;;  %v1652_v6 = vmul.f32 %v1651_v3, %v1562_v51 }
0x1db2   :  { %v1655_v5 = vpop.permute.xlu0 %1654 }
0x1db3   :  { %v1657_v8 = vmul.f32 %v1655_v5, %v1651_v3 }
0x1db5   :  { %1659 = vrot.lane.b32.xlu1 %v1657_v8, %s2968_s22 }
0x1e27   :  { %v1660_v11 = vpop.permute.xlu1 %1659 }
0x1e28   :  { %v1662_v12 = vadd.f32 %v1660_v11, %v1652_v6 }
0x1e2a   :  { %2774 = vtanh.f32 %v1662_v12 }
0x1e34   :  { %v2775_v13 = vpop.eup %2774 }
0x1e35   :  { %1665 = vrot.lane.b32.xlu0 %v2775_v13, %s2967_s3 }
0x1ea7   :  { %v1666_v14 = vpop.permute.xlu0 %1665 }
0x1ea8   :  { %v1668_v16 = vmul.f32 %v1666_v14, %v1651_v3  ;;  %v1259_v14 = vadd.f32 %v3359_v33, %v3320_v36 }
0x1eaa   :  { %1671 = vrot.lane.b32.xlu1 %v1668_v16, %s2968_s22 }
0x1f1c   :  { %v1672_v17 = vpop.permute.xlu1 %1671 }
0x1f1d   :  { %2526 = vmatmul.mubr.msk.f32.vlgmr.msra.gmra.mrb[22].mxu1 %vm269_vm4, %v1672_v17 }
0x1f1e   :  { %2698 = vmatpush3.bf16.msra.mxu1 %v3290_v24  ;;  %2547 = vmatprep.mubr.msk.f32.mxu1 %vm2965_vm0, %v2966_v1 }
0x1f1f   :  { %2699 = vmatprep.subr.bf16.mxu1 %v2964_v0 }
0x1f22   :  { %2701 = vmatpush3.bf16.msra.mxu1 %v3294_v28 }
0x1f23   :  { %2708 = vmatprep.subr.bf16.mxu1 %v2964_v0 }
0x1ff0   :  { %v1741_v20 = vpop.f32.mrb[22].mxu1 }
0x1ff1   :  { %v1745_v21 = vadd.f32 %v1741_v20, %v1244_v18  ;;  %v2527_v22 = vpop.f32.mrb[23].mxu1 }
0x1ff3   :  { %v1746_v23 = vmul.f32 0.5, %v1745_v21 }
0x1ff5   :  { %v1747_v25 = vsel %vm3160_vm3, %v1745_v21, %v1746_v23 }
0x1ff6   :  { %2776 = vtanh.f32 %v1747_v25 }
0x2000   :  { %v2777_v4 = vpop.eup %2776 }
0x2001   :  { %v1749_v27 = vmul.f32 0.5, %v2777_v4 }
0x2003   :  { %v1750_v29 = vadd.f32 0.5, %v1749_v27 }
0x2005   :  { %v1751_v30 = vsel %vm3160_vm3, %v2777_v4, %v1750_v29 }
0x2006   :  { %1754 = vrot.lane.b32.xlu0 %v1751_v30, %s2967_s3  ;;  %v1752_v10 = vmul.f32 %v1751_v30, %v1662_v12 }
0x2078   :  { %v1755_v31 = vpop.permute.xlu0 %1754 }
0x2079   :  { %v1757_v32 = vmul.f32 %v1755_v31, %v1751_v30  ;;  %v2069_v31 = vld [vmem:[#allocation13] sm:$0xff] }
0x207b   :  { %1759 = vrot.lane.b32.xlu1 %v1757_v32, %s2968_s22  ;;  %v2070_v32 = vld [vmem:[#allocation13 + $0x8] sm:$0xff] }
0x20ed   :  { %v1760_v15 = vpop.permute.xlu1 %1759 }
0x20ee   :  { %v1762_v35 = vadd.f32 %v1760_v15, %v1752_v10  ;;  %v2071_v10 = vld [vmem:[#allocation13 + $0x10] sm:$0xff]  ;;  %v2709_v15 = vpack.c.bf16 %v2070_v32, %v2069_v31 }
0x20f0   :  { %2778 = vtanh.f32 %v1762_v35 }
0x20fa   :  { %v2779_v37 = vpop.eup %2778 }
0x20fb   :  { %1765 = vrot.lane.b32.xlu0 %v2779_v37, %s2967_s3 }
0x216d   :  { %v1766_v19 = vpop.permute.xlu0 %1765 }
0x216e   :  { %v1768_v39 = vmul.f32 %v1766_v19, %v1751_v30 }
0x2170   :  { %1771 = vrot.lane.b32.xlu1 %v1768_v39, %s2968_s22 }
0x21e2   :  { %v1772_v40 = vpop.permute.xlu1 %1771 }
0x21e3   :  { %2537 = vmatmul.mubr.msk.f32.vlgmr.msra.gmra.mrb[18].mxu0 %vm269_vm4, %v1772_v40 }
0x21e4   :  { %2704 = vmatpush3.bf16.msra.mxu0 %v3290_v24  ;;  %2558 = vmatprep.mubr.msk.f32.mxu0 %vm2965_vm0, %v2966_v1 }
0x21e5   :  { %2705 = vmatprep.subr.bf16.mxu0 %v2964_v0 }
0x21e8   :  { %2707 = vmatpush3.bf16.msra.mxu0 %v3294_v28 }
0x22b6   :  { %v1841_v42 = vpop.f32.mrb[18].mxu0 }
0x22b7   :  { %v1845_v44 = vadd.f32 %v1841_v42, %v1249_v41  ;;  %v2538_v38 = vpop.f32.mrb[19].mxu0  ;;  %v2198_v41 = vld [vmem:[%s3481_s8] ss:$0 sm:$0xff] }
0x22b9   :  { %v1846_v26 = vmul.f32 0.5, %v1845_v44 }
0x22bb   :  { %v1847_v45 = vsel %vm3160_vm3, %v1845_v44, %v1846_v26 }
0x22bc   :  { %2780 = vtanh.f32 %v1847_v45 }
0x22c6   :  { %v2781_v46 = vpop.eup %2780 }
0x22c7   :  { %v1849_v24 = vmul.f32 0.5, %v2781_v46 }
0x22c9   :  { %v1850_v47 = vadd.f32 0.5, %v1849_v24 }
0x22cb   :  { %v1851_v48 = vsel %vm3160_vm3, %v2781_v46, %v1850_v47 }
0x22cc   :  { %1854 = vrot.lane.b32.xlu0 %v1851_v48, %s2967_s3  ;;  %v1852_v9 = vmul.f32 %v1851_v48, %v1762_v35  ;;  %v2072_v35 = vld [vmem:[#allocation13 + $0x18] sm:$0xff] }
0x22cd   :  { %v2712_v37 = vpack.c.bf16 %v2072_v35, %v2071_v10 }
0x233e   :  { %v1855_v28 = vpop.permute.xlu0 %1854 }
0x233f   :  { %v1857_v49 = vmul.f32 %v1855_v28, %v1851_v48 }
0x2341   :  { %1859 = vrot.lane.b32.xlu1 %v1857_v49, %s2968_s22 }
0x23b3   :  { %v1860_v7 = vpop.permute.xlu1 %1859 }
0x23b4   :  { %v1862_v50 = vadd.f32 %v1860_v7, %v1852_v9 }
0x23b6   :  { %2782 = vtanh.f32 %v1862_v50 }
0x23c0   :  { %v2783_v51 = vpop.eup %2782 }
0x23c1   :  { %1865 = vrot.lane.b32.xlu0 %v2783_v51, %s2967_s3 }
0x2433   :  { %v1866_v52 = vpop.permute.xlu0 %1865 }
0x2434   :  { %v1868_v53 = vmul.f32 %v1866_v52, %v1851_v48 }
0x2436   :  { %1871 = vrot.lane.b32.xlu1 %v1868_v53, %s2968_s22 }
0x24a8   :  { %v1872_v54 = vpop.permute.xlu1 %1871 }
0x24a9   :  { %2548 = vmatmul.mubr.msk.f32.vlgmr.msra.gmra.mrb[24].mxu1 %vm269_vm4, %v1872_v54 }
0x24aa   :  { %2569 = vmatprep.mubr.msk.f32.mxu1 %vm2965_vm0, %v2966_v1  ;;  %2710 = vmatpush3.bf16.msra.mxu1 %v2709_v15 }
0x24ab   :  { %2711 = vmatprep.subr.bf16.mxu1 %v2964_v0 }
0x24ae   :  { %2713 = vmatpush3.bf16.msra.mxu1 %v2712_v37 }
0x257c   :  { %v1941_v56 = vpop.f32.mrb[24].mxu1 }
0x257d   :  { %v1945_v57 = vadd.f32 %v1941_v56, %v1254_v55  ;;  %v2549_v58 = vpop.f32.mrb[25].mxu1 }
0x257f   :  { %v1946_v59 = vmul.f32 0.5, %v1945_v57 }
0x2581   :  { %v1947_v60 = vsel %vm3160_vm3, %v1945_v57, %v1946_v59 }
0x2582   :  { %2784 = vtanh.f32 %v1947_v60 }
0x258c   :  { %v2785_v61 = vpop.eup %2784 }
0x258d   :  { %v1949_v62 = vmul.f32 0.5, %v2785_v61 }
0x258f   :  { %v1950_v63 = vadd.f32 0.5, %v1949_v62 }
0x2591   :  { %v1951_v2 = vsel %vm3160_vm3, %v2785_v61, %v1950_v63 }
0x2592   :  { %1954 = vrot.lane.b32.xlu0 %v1951_v2, %s2967_s3  ;;  %v1952_v34 = vmul.f32 %v1951_v2, %v1862_v50 }
0x2604   :  { %v1955_v1 = vpop.permute.xlu0 %1954 }
0x2605   :  { %v1957_v3 = vmul.f32 %v1955_v1, %v1951_v2 }
0x2607   :  { %1959 = vrot.lane.b32.xlu1 %v1957_v3, %s2968_s22 }
0x2679   :  { %v1960_v5 = vpop.permute.xlu1 %1959 }
0x267a   :  { %v1962_v8 = vadd.f32 %v1960_v5, %v1952_v34 }
0x267c   :  { %2786 = vtanh.f32 %v1962_v8 }
0x2686   :  { %v2787_v6 = vpop.eup %2786 }
0x2687   :  { %1965 = vrot.lane.b32.xlu0 %v2787_v6, %s2967_s3 }
0x26f9   :  { %v1966_v11 = vpop.permute.xlu0 %1965 }
0x26fa   :  { %v1968_v12 = vmul.f32 %v1966_v11, %v1951_v2 }
0x26fc   :  { %1971 = vrot.lane.b32.xlu1 %v1968_v12, %s2968_s22 }
0x276e   :  { %v1972_v13 = vpop.permute.xlu1 %1971 }
0x276f   :  { %2559 = vmatmul.mubr.msk.f32.vlgmr.msra.gmra.mrb[20].mxu0 %vm269_vm4, %v1972_v13 }
0x2842   :  { %v2041_v16 = vpop.f32.mrb[20].mxu0 }
0x2843   :  { %v2045_v17 = vadd.f32 %v2041_v16, %v1259_v14  ;;  %v2560_v18 = vpop.f32.mrb[21].mxu0 }
0x2845   :  { %v2046_v20 = vmul.f32 0.5, %v2045_v17 }
0x2847   :  { %v2047_v21 = vsel %vm3160_vm3, %v2045_v17, %v2046_v20 }
0x2848   :  { %2788 = vtanh.f32 %v2047_v21 }
0x2852   :  { %v2789_v22 = vpop.eup %2788 }
0x2853   :  { %v2049_v23 = vmul.f32 0.5, %v2789_v22 }
0x2855   :  { %v2050_v25 = vadd.f32 0.5, %v2049_v23 }
0x2857   :  { %v2051_v4 = vsel %vm3160_vm3, %v2789_v22, %v2050_v25 }
0x2858   :  { %2054 = vrot.lane.b32.xlu0 %v2051_v4, %s2967_s3  ;;  %v2052_v36 = vmul.f32 %v2051_v4, %v1962_v8 }
0x28ca   :  { %v2055_v27 = vpop.permute.xlu0 %2054 }
0x28cb   :  { %v2057_v29 = vmul.f32 %v2055_v27, %v2051_v4 }
0x28cd   :  { %2059 = vrot.lane.b32.xlu1 %v2057_v29, %s2968_s22 }
0x293f   :  { %v2060_v33 = vpop.permute.xlu1 %2059 }
0x2940   :  { %v2062_v30 = vadd.f32 %v2060_v33, %v2052_v36 }
0x2942   :  { %2790 = vtanh.f32 %v2062_v30 }
0x294c   :  { %v2791_v43 = vpop.eup %2790 }
0x294d   :  { %2065 = vrot.lane.b32.xlu0 %v2791_v43, %s2967_s3 }
0x29bf   :  { %v2066_v19 = vpop.permute.xlu0 %2065 }
0x29c0   :  { %v2068_v39 = vmul.f32 %v2066_v19, %v2051_v4 }
0x29c2   :  { %2081 = vrot.lane.b32.xlu1 %v2068_v39, %s2968_s22 }
0x2a34   :  { %v2082_v40 = vpop.permute.xlu1 %2081 }
0x2a35   :  { %2570 = vmatmul.mubr.msk.f32.vlgmr.msra.gmra.mrb[26].mxu1 %vm269_vm4, %v2082_v40 }
0x2b08   :  { %v2151_v42 = vpop.f32.mrb[26].mxu1 }
0x2b09   :  { %v2152_v44 = vadd.f32 %v2198_v41, %v2151_v42  ;;  %v2571_v0 = vpop.f32.mrb[27].mxu1 }
0x2b0b   :  { %2155 = vst [vmem:[#allocation15] sm:$0xff] %v2152_v44 }
0x2b0c   :  { %2935 = shalt.err (!%p2932_p10)
}
0x2b0d   :  { %s2936_s4 = scalar_lea.hbm %s3482_s9, 128 }
0x2b0e   :  { %p2937_p11 = scmp.ne.s32.totalorder %s3482_s9, %s2936_s4  ;;  %p2940_p12 = scmp.lt.u32.totalorder %s2936_s4, %s3482_s9 }
0x2b10   :  { %p2942_p13 = pnand %p2940_p12, %p2937_p11 }
0x2b12   :  { %2945 = shalt.err (!%p2942_p13)
}
0x2b13   :  { %2165 = dma.vmem_to_hbm [thread:$0]  %s2163_s23, 128, %s3482_s9, [#allocation6]  }
0x2b14   :  { %2954 = dma.done.wait [#allocation6], 128  }
0x2b15   :  { %2955 = vsyncadd [#allocation6], 4294967168 }
0x2b16   :  { %2169 = vsyncpa [#allocation5], 1 }
0x2b17   :  { %2170 = vsyncpa [#allocation8], 1 }
0x2b18   :  { %2171 = vsyncpa [#allocation11], 1 }
0x2b19   :  { %2172 = vsyncpa [#allocation14], 1 }
0x2b1a   :  { %2173 = vsyncpa [#allocation6], 1 }

</bundles_post_ra>
